<compile_context>
chip_gen: v7x
topology: tpu7x:2x2x1
jax: 0.10.0
libtpu: 0.0.40
codegen_flags: <defaults>
</compile_context>

<pallas_src>
import functools

import jax
import jax.numpy as jnp
from jax.experimental import pallas as pl
from jax.experimental.pallas import tpu as pltpu


def _round_up(x, m):
    return ((x + m - 1) // m) * m


def _pick_tile(dim, cap):
    """Largest 128-multiple <= cap that evenly divides dim (dim is a 128-multiple)."""
    if dim <= cap:
        return dim
    t = (cap // 128) * 128
    while dim % t != 0:
        t -= 128
    return t


def _maybe_pad2(a, rows, cols):
    if a.shape == (rows, cols):
        return a
    return jnp.pad(a, ((0, rows - a.shape[0]), (0, cols - a.shape[1])))


def _maybe_pad1(a, n):
    if a.shape[0] == n:
        return a
    return jnp.pad(a, (0, n - a.shape[0]))


def _to_bf16(a):
    return a if a.dtype == jnp.bfloat16 else a.astype(jnp.bfloat16)


# ----------------------------------------------------------------------------
# GELU (tanh form -> single EUP op instead of VALU-heavy rational erf)
# ----------------------------------------------------------------------------
def _gelu_tanh(x):
    c = 0.7978845608028654  # sqrt(2/pi)
    return 0.5 * x * (1.0 + jnp.tanh(c * (x + 0.044715 * x * x * x)))


def _layernorm_math(x, g, b):
    mean = jnp.mean(x, axis=-1, keepdims=True)
    var = jnp.mean(jnp.square(x - mean), axis=-1, keepdims=True)
    inv = jax.lax.rsqrt(var + 1e-12)
    return (x - mean) * inv * g + b


# ----------------------------------------------------------------------------
# Tiled GEMM (+ bias, + optional fused GELU epilogue), bf16 out
# ----------------------------------------------------------------------------
def _matmul_kernel(a_ref, b_ref, bias_ref, o_ref, acc_ref, *, activation):
    @pl.when(pl.program_id(2) == 0)
    def _():
        acc_ref[...] = jnp.zeros_like(acc_ref)

    acc_ref[...] += jnp.dot(a_ref[...], b_ref[...],
                            preferred_element_type=jnp.float32)

    @pl.when(pl.program_id(2) == pl.num_programs(2) - 1)
    def _():
        out = acc_ref[...] + bias_ref[...]
        if activation == "gelu":
            out = _gelu_tanh(out)
        o_ref[...] = out.astype(o_ref.dtype)


def pallas_linear(x, w, b, activation=None, tm=512, tn=512, tk=1024):
    """x: (M,K), w: (K,N) (bf16 preferred), b: (N,) -> (M,N) bf16. f32 accumulation."""
    M, K = x.shape
    N = w.shape[1]
    tm = min(tm, _round_up(M, 8))
    Mp = _round_up(M, tm)
    Kp = _round_up(K, 128)
    tk = _pick_tile(Kp, tk)          # never over-pads K; 1 reduction step when K fits
    Np = _round_up(N, 128)
    tn = _pick_tile(Np, tn)

    xp = _to_bf16(_maybe_pad2(x, Mp, Kp))
    wp = _to_bf16(_maybe_pad2(w, Kp, Np))
    bp = _maybe_pad1(b, Np).astype(jnp.float32).reshape(1, Np)

    kern = functools.partial(_matmul_kernel, activation=activation)
    out = pl.pallas_call(
        kern,
        out_shape=jax.ShapeDtypeStruct((Mp, Np), jnp.bfloat16),
        grid=(Mp // tm, Np // tn, Kp // tk),
        in_specs=[
            pl.BlockSpec((tm, tk), lambda i, j, k: (i, k)),
            pl.BlockSpec((tk, tn), lambda i, j, k: (k, j)),
            pl.BlockSpec((1, tn), lambda i, j, k: (0, j)),
        ],
        out_specs=pl.BlockSpec((tm, tn), lambda i, j, k: (i, j)),
        scratch_shapes=[pltpu.VMEM((tm, tn), jnp.float32)],
        compiler_params=pltpu.CompilerParams(
            dimension_semantics=("parallel", "parallel", "arbitrary")),
    )(xp, wp, bp)
    if (Mp, Np) != (M, N):
        out = out[:M, :N]
    return out


# ----------------------------------------------------------------------------
# GEMM + bias + residual + LayerNorm fully fused (tn = full N), bf16 out
# ----------------------------------------------------------------------------
def _matmul_ln_kernel(a_ref, b_ref, bias_ref, res_ref, g_ref, beta_ref, o_ref, acc_ref):
    @pl.when(pl.program_id(1) == 0)
    def _():
        acc_ref[...] = jnp.zeros_like(acc_ref)

    acc_ref[...] += jnp.dot(a_ref[...], b_ref[...],
                            preferred_element_type=jnp.float32)

    @pl.when(pl.program_id(1) == pl.num_programs(1) - 1)
    def _():
        x = acc_ref[...] + bias_ref[...] + res_ref[...].astype(jnp.float32)
        o_ref[...] = _layernorm_math(x, g_ref[...], beta_ref[...]).astype(o_ref.dtype)


def pallas_linear_ln(x, w, b, residual, gamma, beta, tm=512, tk=1024):
    """LayerNorm(x @ w + b + residual) fused into the GEMM epilogue. bf16 out."""
    M, K = x.shape
    N = w.shape[1]
    if N % 128 != 0:
        # Row-wise LN epilogue needs an unpadded N tile; fall back to unfused path.
        y = pallas_linear(x, w, b)
        return pallas_layernorm(y, gamma, beta, residual=residual)

    tm = min(tm, _round_up(M, 8))
    Mp = _round_up(M, tm)
    Kp = _round_up(K, 128)
    tk = _pick_tile(Kp, tk)

    xp = _to_bf16(_maybe_pad2(x, Mp, Kp))
    wp = _to_bf16(_maybe_pad2(w, Kp, N))
    rp = _to_bf16(_maybe_pad2(residual, Mp, N))
    bp = b.astype(jnp.float32).reshape(1, N)
    gp = gamma.astype(jnp.float32).reshape(1, N)
    betap = beta.astype(jnp.float32).reshape(1, N)

    out = pl.pallas_call(
        _matmul_ln_kernel,
        out_shape=jax.ShapeDtypeStruct((Mp, N), jnp.bfloat16),
        grid=(Mp // tm, Kp // tk),
        in_specs=[
            pl.BlockSpec((tm, tk), lambda i, k: (i, k)),
            pl.BlockSpec((tk, N), lambda i, k: (k, 0)),
            pl.BlockSpec((1, N), lambda i, k: (0, 0)),
            pl.BlockSpec((tm, N), lambda i, k: (i, 0)),
            pl.BlockSpec((1, N), lambda i, k: (0, 0)),
            pl.BlockSpec((1, N), lambda i, k: (0, 0)),
        ],
        out_specs=pl.BlockSpec((tm, N), lambda i, k: (i, 0)),
        scratch_shapes=[pltpu.VMEM((tm, N), jnp.float32)],
        compiler_params=pltpu.CompilerParams(
            dimension_semantics=("parallel", "arbitrary")),
    )(xp, wp, bp, rp, gp, betap)
    if Mp != M:
        out = out[:M]
    return out


# ----------------------------------------------------------------------------
# Standalone (residual-add +) LayerNorm, tiled over rows, bf16 out
# ----------------------------------------------------------------------------
def _layernorm_kernel(x_ref, g_ref, b_ref, o_ref):
    x = x_ref[...].astype(jnp.float32)
    o_ref[...] = _layernorm_math(x, g_ref[...], b_ref[...]).astype(o_ref.dtype)


def _add_layernorm_kernel(x_ref, r_ref, g_ref, b_ref, o_ref):
    x = x_ref[...].astype(jnp.float32) + r_ref[...].astype(jnp.float32)
    o_ref[...] = _layernorm_math(x, g_ref[...], b_ref[...]).astype(o_ref.dtype)


def pallas_layernorm(x, gamma, beta, residual=None, tm=512):
    M, H = x.shape
    tm = min(tm, _round_up(M, 8))
    Mp = _round_up(M, tm)
    xp = _maybe_pad2(x, Mp, H)
    g = gamma.astype(jnp.float32).reshape(1, H)
    b = beta.astype(jnp.float32).reshape(1, H)
    row_spec = pl.BlockSpec((tm, H), lambda i: (i, 0))
    vec_spec = pl.BlockSpec((1, H), lambda i: (0, 0))
    cp = pltpu.CompilerParams(dimension_semantics=("parallel",))
    if residual is None:
        out = pl.pallas_call(
            _layernorm_kernel,
            out_shape=jax.ShapeDtypeStruct((Mp, H), jnp.bfloat16),
            grid=(Mp // tm,),
            in_specs=[row_spec, vec_spec, vec_spec],
            out_specs=row_spec,
            compiler_params=cp,
        )(xp, g, b)
    else:
        rp = _maybe_pad2(residual, Mp, H)
        out = pl.pallas_call(
            _add_layernorm_kernel,
            out_shape=jax.ShapeDtypeStruct((Mp, H), jnp.bfloat16),
            grid=(Mp // tm,),
            in_specs=[row_spec, row_spec, vec_spec, vec_spec],
            out_specs=row_spec,
            compiler_params=cp,
        )(xp, rp, g, b)
    if Mp != M:
        out = out[:M]
    return out


# ----------------------------------------------------------------------------
# Multi-head attention: consumes fused QKV (1, L, 3H) per batch element, writes
# head-merged lane-dense (1, L, H) bf16 (no XLA slices / transposes / casts).
# ----------------------------------------------------------------------------
def _attention_kernel(qkv_ref, mask_ref, o_ref, *, num_heads, scale):
    qkv = qkv_ref[0]                         # (L, 3H) bf16
    H = o_ref.shape[-1]
    Dh = H // num_heads
    mask = mask_ref[0]                       # (1, L) f32 additive bias, broadcast over rows
    ctx_heads = []
    for h in range(num_heads):               # static unroll; nh is small
        q = qkv[:, h * Dh:(h + 1) * Dh]
        k = qkv[:, H + h * Dh:H + (h + 1) * Dh]
        v = qkv[:, 2 * H + h * Dh:2 * H + (h + 1) * Dh]
        s = jax.lax.dot_general(q, k, (((1,), (1,)), ((), ())),
                                preferred_element_type=jnp.float32)   # (L, L)
        s = s * scale + mask
        m = jnp.max(s, axis=-1, keepdims=True)
        p = jnp.exp(s - m)
        denom = jnp.sum(p, axis=-1, keepdims=True)
        p = p * pl.reciprocal(denom, approx=True)       # EUP slot, not VALU divide
        ctx = jnp.dot(p.astype(v.dtype), v, preferred_element_type=jnp.float32)
        ctx_heads.append(ctx)
    o_ref[0] = jnp.concatenate(ctx_heads, axis=-1).astype(o_ref.dtype)


def pallas_attention(qkv, mask_bias, num_heads, hidden_size):
    """qkv: (B, L, 3H) bf16; mask_bias: (B, 1, L) f32 -> (B, L, H) bf16, head-merged."""
    B, L, threeH = qkv.shape
    H = hidden_size
    Dh = H // num_heads
    scale = 1.0 / float(Dh) ** 0.5
    kern = functools.partial(_attention_kernel, num_heads=num_heads, scale=scale)
    return pl.pallas_call(
        kern,
        out_shape=jax.ShapeDtypeStruct((B, L, H), jnp.bfloat16),
        grid=(B,),
        in_specs=[pl.BlockSpec((1, L, threeH), lambda b: (b, 0, 0)),
                  pl.BlockSpec((1, 1, L), lambda b: (b, 0, 0))],
        out_specs=pl.BlockSpec((1, L, H), lambda b: (b, 0, 0)),
        compiler_params=pltpu.CompilerParams(
            dimension_semantics=("parallel",),
            vmem_limit_bytes=64 * 1024 * 1024),
    )(qkv, mask_bias)


# ----------------------------------------------------------------------------
# BERT encoder (output_hidden_states=True); activations bf16 end-to-end
# ----------------------------------------------------------------------------
def bert_embeddings(input_ids, token_type_ids, p):
    B, L = input_ids.shape
    H = p["word_emb"].shape[1]
    x = (p["word_emb"][input_ids]
         + p["pos_emb"][None, :L]
         + p["type_emb"][token_type_ids])
    return pallas_layernorm(x.reshape(B * L, H), p["emb_ln_g"], p["emb_ln_b"])  # (B*L,H) bf16


def bert_layer(x2, p, mask_bias, num_heads, B, L):
    H = x2.shape[-1]

    # Fused QKV projection: one (H, 3H) GEMM; attention reads the (B, L, 3H) result directly.
    qkv = pallas_linear(x2, p["qkv_w"], p["qkv_b"])                  # (B*L, 3H) bf16
    ctx = pallas_attention(qkv.reshape(B, L, 3 * H), mask_bias, num_heads, H)  # (B,L,H) bf16
    ctx2 = ctx.reshape(B * L, H)

    # attn-out projection + residual + LayerNorm fused into one kernel
    x2 = pallas_linear_ln(ctx2, p["o_w"], p["o_b"], x2, p["ln1_g"], p["ln1_b"])

    h = pallas_linear(x2, p["ffn1_w"], p["ffn1_b"], activation="gelu")   # fused GELU
    # FFN2 projection + residual + LayerNorm fused into one kernel
    x2 = pallas_linear_ln(h, p["ffn2_w"], p["ffn2_b"], x2, p["ln2_g"], p["ln2_b"])
    return x2


# ----------------------------------------------------------------------------
# FPN tail — tiny convs (Cout=4, tiny spatial); left to XLA per perf analysis
# ----------------------------------------------------------------------------
def _conv2d_nchw(x, w, b, padding):
    y = jax.lax.conv_general_dilated(
        x, w, window_strides=(1, 1), padding=padding,
        dimension_numbers=("NCHW", "OIHW", "NCHW"))
    return y + b[None, :, None, None]


# TODO(synk): the FPN class body is not in the reference snippet; we assume the standard
# FPN: per-level 1x1 lateral convs -> top-down elementwise additions -> final 3x3
# smoothing conv, returning a single (B, out_channels, H, W) tensor.
def fpn_forward(feats, params):
    laterals = [_conv2d_nchw(f, params["lat_w"][i], params["lat_b"][i], "VALID")
                for i, f in enumerate(feats)]
    p = laterals[-1]
    for i in range(len(laterals) - 2, -1, -1):
        p = laterals[i] + p
    return _conv2d_nchw(p, params["smooth_w"], params["smooth_b"], ((1, 1), (1, 1)))


# ----------------------------------------------------------------------------
# BertYForClassification.forward
# ----------------------------------------------------------------------------
def bert_y_forward(params, input_ids, attention_mask, token_type_ids, *, cfg):
    B, L = input_ids.shape
    H = cfg["hidden_size"]
    nh = cfg["num_heads"]

    # Additive attention bias (B, 1, L), broadcast over heads/rows inside the kernel.
    mask_bias = ((1.0 - attention_mask.astype(jnp.float32)) * -1e9)[:, None, :]

    x2 = bert_embeddings(input_ids, token_type_ids, params["emb"])   # (B*L, H) bf16
    hidden_states = [x2.reshape(B, L, H)]
    for lp in params["layers"]:
        x2 = bert_layer(x2, lp, mask_bias, nh, B, L)
        hidden_states.append(x2.reshape(B, L, H))

    # cat([h.unsqueeze(1) for h in hidden_states[-3:]], dim=1) -> (B, 3, L, H)
    x = jnp.stack(hidden_states[-3:], axis=1).astype(jnp.float32)
    x = jnp.transpose(x, (0, 3, 1, 2))                 # permute(0,3,1,2) -> (B, H, 3, L)
    c = H // 4
    feats = (x[:, 0:c], x[:, c:2 * c], x[:, 2 * c:3 * c], x[:, 3 * c:])
    x = fpn_forward(feats, params["fpn"])              # (B, 4, 3, L)

    x = jnp.transpose(x, (0, 3, 1, 2))                 # (B, L, 4, 3)
    s = cfg["seq_split"]
    feats2 = (x[:, 0:s], x[:, s:2 * s], x[:, 2 * s:3 * s], x[:, 3 * s:])
    x = fpn_forward(feats2, params["fpn_seq"])         # (B, 4, 4, 3)

    x = x.reshape(B, -1)                               # flatten(start_dim=1) -> (B, 48)
    # dropout is identity at inference time; 48xC fc left to XLA (launch overhead > compute)
    logits = jnp.dot(x, params["fc1_w"]) + params["fc1_b"]
    return logits


# ----------------------------------------------------------------------------
# Deterministic parameter init (synthetic; no checkpoint load).
# Encoder matmul weights stored in bf16 once (no per-call cast pass).
# ----------------------------------------------------------------------------
def init_params(key, cfg):
    H = cfg["hidden_size"]
    V = cfg["vocab_size"]
    L = cfg["max_seq_len"]
    I = cfg["intermediate_size"]
    keys = iter(jax.random.split(key, 512))

    def nrm(shape, scale=0.02, dtype=jnp.float32):
        return (scale * jax.random.normal(next(keys), shape, jnp.float32)).astype(dtype)

    emb = dict(word_emb=nrm((V, H)), pos_emb=nrm((L, H)), type_emb=nrm((2, H)),
               emb_ln_g=jnp.ones((H,), jnp.float32),
               emb_ln_b=jnp.zeros((H,), jnp.float32))

    layers = []
    for _ in range(cfg["num_layers"]):
        q_w, k_w, v_w = nrm((H, H)), nrm((H, H)), nrm((H, H))
        layers.append(dict(
            # Q/K/V pre-fused into one (H, 3H) bf16 weight.
            qkv_w=jnp.concatenate([q_w, k_w, v_w], axis=1).astype(jnp.bfloat16),
            qkv_b=jnp.zeros((3 * H,), jnp.float32),
            o_w=nrm((H, H), dtype=jnp.bfloat16), o_b=jnp.zeros((H,), jnp.float32),
            ln1_g=jnp.ones((H,), jnp.float32), ln1_b=jnp.zeros((H,), jnp.float32),
            ffn1_w=nrm((H, I), dtype=jnp.bfloat16), ffn1_b=jnp.zeros((I,), jnp.float32),
            ffn2_w=nrm((I, H), dtype=jnp.bfloat16), ffn2_b=jnp.zeros((H,), jnp.float32),
            ln2_g=jnp.ones((H,), jnp.float32), ln2_b=jnp.zeros((H,), jnp.float32),
        ))

    def fpn_params(in_chs, out_ch):
        return dict(
            lat_w=[nrm((out_ch, cc, 1, 1), 0.1) for cc in in_chs],
            lat_b=[jnp.zeros((out_ch,), jnp.float32) for _ in in_chs],
            smooth_w=nrm((out_ch, out_ch, 3, 3), 0.1),
            smooth_b=jnp.zeros((out_ch,), jnp.float32),
        )

    c = H // 4
    s = cfg["seq_split"]
    fpn = fpn_params([c] * 4, 4)                       # FPN([256]*4, 4) analogue
    fpn_seq = fpn_params([s, s, s, L - 3 * s], 4)      # FPN([128,128,128,70], 4) analogue

    fc_hidden = 4 * 4 * 3                              # config.fc_hidden (= 48)
    fc1_w = nrm((fc_hidden, cfg["num_classes"]), 0.1)
    fc1_b = jnp.zeros((cfg["num_classes"],), jnp.float32)

    return dict(emb=emb, layers=layers, fpn=fpn, fpn_seq=fpn_seq,
                fc1_w=fc1_w, fc1_b=fc1_b)


if __name__ == "__main__":
    # Small shapes consistent with the module structure: hidden 128 (split into 4x32 for
    # the first FPN), seq 16 (split [4,4,4,4] for fpn_seq, mirroring [128,128,128,70]),
    # 3 encoder layers so the last-3 hidden-state concat is meaningful, fc_hidden = 48.
    cfg = dict(vocab_size=50, hidden_size=128, num_heads=4, intermediate_size=256,
               num_layers=3, max_seq_len=16, seq_split=4, num_classes=3)

    key = jax.random.PRNGKey(0)
    pkey, ikey = jax.random.split(key)
    params = init_params(pkey, cfg)

    B, L = 2, cfg["max_seq_len"]
    input_ids = jax.random.randint(ikey, (B, L), 0, cfg["vocab_size"], dtype=jnp.int32)
    attention_mask = jnp.ones((B, L), jnp.int32).at[1, 12:].set(0)
    token_type_ids = jnp.zeros((B, L), jnp.int32)

    fwd = jax.jit(functools.partial(bert_y_forward, cfg=cfg))
    logits = fwd(params, input_ids, attention_mask, token_type_ids)
    jax.block_until_ready(logits)
    assert logits.shape == (B, cfg["num_classes"]), logits.shape
    assert bool(jnp.all(jnp.isfinite(logits)))
    print("KERNEL_OK")
</pallas_src>

<mosaic_0001>
module attributes {stable_mosaic.version = 11 : i64} {
  func.func @_attention_kernel(%arg0: i32, %arg1: memref<1x16x384xbf16, #tpu.memory_space<vmem>>, %arg2: memref<1x1x16xf32, #tpu.memory_space<vmem>>, %arg3: memref<1x16x128xbf16, #tpu.memory_space<vmem>>) attributes {dimension_semantics = [#tpu.dimension_semantics<parallel>], iteration_bounds = array<i64: 2>, scalar_prefetch = 0 : i64, scratch_operands = 0 : i64, tpu.core_type = #tpu.core_type<tc>, window_params = [{transform_indices = @transform_0, window_bounds = array<i64: 1, 16, 384>}, {transform_indices = @transform_1, window_bounds = array<i64: 1, 1, 16>}, {transform_indices = @transform_2, window_bounds = array<i64: 1, 16, 128>}]} {
    %c0 = arith.constant 0 : index
    %c0_0 = arith.constant 0 : index
    %c0_1 = arith.constant 0 : index
    %0 = vector.load %arg1[%c0, %c0_0, %c0_1] : memref<1x16x384xbf16, #tpu.memory_space<vmem>>, vector<1x16x384xbf16>
    %1 = vector.shape_cast %0 : vector<1x16x384xbf16> to vector<16x384xbf16>
    %c0_2 = arith.constant 0 : index
    %c0_3 = arith.constant 0 : index
    %c0_4 = arith.constant 0 : index
    %2 = vector.load %arg2[%c0_2, %c0_3, %c0_4] : memref<1x1x16xf32, #tpu.memory_space<vmem>>, vector<1x1x16xf32>
    %3 = vector.shape_cast %2 : vector<1x1x16xf32> to vector<1x16xf32>
    %4 = vector.extract_strided_slice %1 {offsets = [0, 0], sizes = [16, 32], strides = [1, 1]} : vector<16x384xbf16> to vector<16x32xbf16>
    %5 = vector.extract_strided_slice %1 {offsets = [0, 128], sizes = [16, 32], strides = [1, 1]} : vector<16x384xbf16> to vector<16x32xbf16>
    %6 = vector.extract_strided_slice %1 {offsets = [0, 256], sizes = [16, 32], strides = [1, 1]} : vector<16x384xbf16> to vector<16x32xbf16>
    %cst = arith.constant dense<0.000000e+00> : vector<16x16xf32>
    %7 = tpu.matmul %4, %5, %cst {dimension_numbers = #tpu.dot_dimension_numbers<[1], [1], [0], [0], [0, 0, 1, 0], [], []>} : vector<16x32xbf16>, vector<16x32xbf16>, vector<16x16xf32> -> vector<16x16xf32>
    %cst_5 = arith.constant 0.176776692 : f32
    %8 = vector.broadcast %cst_5 : f32 to vector<16x16xf32>
    %9 = arith.mulf %7, %8 : vector<16x16xf32>
    %10 = vector.broadcast %3 : vector<1x16xf32> to vector<16x16xf32>
    %11 = arith.addf %9, %10 : vector<16x16xf32>
    %cst_6 = arith.constant dense<0xFF800000> : vector<16xf32>
    %12 = vector.multi_reduction <maximumf>, %11, %cst_6 [1] : vector<16x16xf32> to vector<16xf32>
    %13 = vector.shape_cast %12 : vector<16xf32> to vector<16x1xf32>
    %14 = vector.broadcast %13 : vector<16x1xf32> to vector<16x16xf32>
    %15 = arith.subf %11, %14 : vector<16x16xf32>
    %16 = math.exp %15 : vector<16x16xf32>
    %cst_7 = arith.constant dense<0.000000e+00> : vector<16xf32>
    %17 = vector.multi_reduction <add>, %16, %cst_7 [1] : vector<16x16xf32> to vector<16xf32>
    %18 = vector.shape_cast %17 : vector<16xf32> to vector<16x1xf32>
    %19 = tpu.reciprocal %18 {approx = true} : vector<16x1xf32> -> vector<16x1xf32>
    %20 = vector.broadcast %19 : vector<16x1xf32> to vector<16x16xf32>
    %21 = arith.mulf %16, %20 : vector<16x16xf32>
    %22 = arith.truncf %21 : vector<16x16xf32> to vector<16x16xbf16>
    %cst_8 = arith.constant dense<0.000000e+00> : vector<16x32xf32>
    %23 = tpu.matmul %22, %6, %cst_8 {dimension_numbers = #tpu.dot_dimension_numbers<[1], [0], [0], [1], [0, 0, 1, 1], [], []>} : vector<16x16xbf16>, vector<16x32xbf16>, vector<16x32xf32> -> vector<16x32xf32>
    %24 = vector.extract_strided_slice %1 {offsets = [0, 32], sizes = [16, 32], strides = [1, 1]} : vector<16x384xbf16> to vector<16x32xbf16>
    %25 = vector.extract_strided_slice %1 {offsets = [0, 160], sizes = [16, 32], strides = [1, 1]} : vector<16x384xbf16> to vector<16x32xbf16>
    %26 = vector.extract_strided_slice %1 {offsets = [0, 288], sizes = [16, 32], strides = [1, 1]} : vector<16x384xbf16> to vector<16x32xbf16>
    %cst_9 = arith.constant dense<0.000000e+00> : vector<16x16xf32>
    %27 = tpu.matmul %24, %25, %cst_9 {dimension_numbers = #tpu.dot_dimension_numbers<[1], [1], [0], [0], [0, 0, 1, 0], [], []>} : vector<16x32xbf16>, vector<16x32xbf16>, vector<16x16xf32> -> vector<16x16xf32>
    %cst_10 = arith.constant 0.176776692 : f32
    %28 = vector.broadcast %cst_10 : f32 to vector<16x16xf32>
    %29 = arith.mulf %27, %28 : vector<16x16xf32>
    %30 = vector.broadcast %3 : vector<1x16xf32> to vector<16x16xf32>
    %31 = arith.addf %29, %30 : vector<16x16xf32>
    %cst_11 = arith.constant dense<0xFF800000> : vector<16xf32>
    %32 = vector.multi_reduction <maximumf>, %31, %cst_11 [1] : vector<16x16xf32> to vector<16xf32>
    %33 = vector.shape_cast %32 : vector<16xf32> to vector<16x1xf32>
    %34 = vector.broadcast %33 : vector<16x1xf32> to vector<16x16xf32>
    %35 = arith.subf %31, %34 : vector<16x16xf32>
    %36 = math.exp %35 : vector<16x16xf32>
    %cst_12 = arith.constant dense<0.000000e+00> : vector<16xf32>
    %37 = vector.multi_reduction <add>, %36, %cst_12 [1] : vector<16x16xf32> to vector<16xf32>
    %38 = vector.shape_cast %37 : vector<16xf32> to vector<16x1xf32>
    %39 = tpu.reciprocal %38 {approx = true} : vector<16x1xf32> -> vector<16x1xf32>
    %40 = vector.broadcast %39 : vector<16x1xf32> to vector<16x16xf32>
    %41 = arith.mulf %36, %40 : vector<16x16xf32>
    %42 = arith.truncf %41 : vector<16x16xf32> to vector<16x16xbf16>
    %cst_13 = arith.constant dense<0.000000e+00> : vector<16x32xf32>
    %43 = tpu.matmul %42, %26, %cst_13 {dimension_numbers = #tpu.dot_dimension_numbers<[1], [0], [0], [1], [0, 0, 1, 1], [], []>} : vector<16x16xbf16>, vector<16x32xbf16>, vector<16x32xf32> -> vector<16x32xf32>
    %44 = vector.extract_strided_slice %1 {offsets = [0, 64], sizes = [16, 32], strides = [1, 1]} : vector<16x384xbf16> to vector<16x32xbf16>
    %45 = vector.extract_strided_slice %1 {offsets = [0, 192], sizes = [16, 32], strides = [1, 1]} : vector<16x384xbf16> to vector<16x32xbf16>
    %46 = vector.extract_strided_slice %1 {offsets = [0, 320], sizes = [16, 32], strides = [1, 1]} : vector<16x384xbf16> to vector<16x32xbf16>
    %cst_14 = arith.constant dense<0.000000e+00> : vector<16x16xf32>
    %47 = tpu.matmul %44, %45, %cst_14 {dimension_numbers = #tpu.dot_dimension_numbers<[1], [1], [0], [0], [0, 0, 1, 0], [], []>} : vector<16x32xbf16>, vector<16x32xbf16>, vector<16x16xf32> -> vector<16x16xf32>
    %cst_15 = arith.constant 0.176776692 : f32
    %48 = vector.broadcast %cst_15 : f32 to vector<16x16xf32>
    %49 = arith.mulf %47, %48 : vector<16x16xf32>
    %50 = vector.broadcast %3 : vector<1x16xf32> to vector<16x16xf32>
    %51 = arith.addf %49, %50 : vector<16x16xf32>
    %cst_16 = arith.constant dense<0xFF800000> : vector<16xf32>
    %52 = vector.multi_reduction <maximumf>, %51, %cst_16 [1] : vector<16x16xf32> to vector<16xf32>
    %53 = vector.shape_cast %52 : vector<16xf32> to vector<16x1xf32>
    %54 = vector.broadcast %53 : vector<16x1xf32> to vector<16x16xf32>
    %55 = arith.subf %51, %54 : vector<16x16xf32>
    %56 = math.exp %55 : vector<16x16xf32>
    %cst_17 = arith.constant dense<0.000000e+00> : vector<16xf32>
    %57 = vector.multi_reduction <add>, %56, %cst_17 [1] : vector<16x16xf32> to vector<16xf32>
    %58 = vector.shape_cast %57 : vector<16xf32> to vector<16x1xf32>
    %59 = tpu.reciprocal %58 {approx = true} : vector<16x1xf32> -> vector<16x1xf32>
    %60 = vector.broadcast %59 : vector<16x1xf32> to vector<16x16xf32>
    %61 = arith.mulf %56, %60 : vector<16x16xf32>
    %62 = arith.truncf %61 : vector<16x16xf32> to vector<16x16xbf16>
    %cst_18 = arith.constant dense<0.000000e+00> : vector<16x32xf32>
    %63 = tpu.matmul %62, %46, %cst_18 {dimension_numbers = #tpu.dot_dimension_numbers<[1], [0], [0], [1], [0, 0, 1, 1], [], []>} : vector<16x16xbf16>, vector<16x32xbf16>, vector<16x32xf32> -> vector<16x32xf32>
    %64 = vector.extract_strided_slice %1 {offsets = [0, 96], sizes = [16, 32], strides = [1, 1]} : vector<16x384xbf16> to vector<16x32xbf16>
    %65 = vector.extract_strided_slice %1 {offsets = [0, 224], sizes = [16, 32], strides = [1, 1]} : vector<16x384xbf16> to vector<16x32xbf16>
    %66 = vector.extract_strided_slice %1 {offsets = [0, 352], sizes = [16, 32], strides = [1, 1]} : vector<16x384xbf16> to vector<16x32xbf16>
    %cst_19 = arith.constant dense<0.000000e+00> : vector<16x16xf32>
    %67 = tpu.matmul %64, %65, %cst_19 {dimension_numbers = #tpu.dot_dimension_numbers<[1], [1], [0], [0], [0, 0, 1, 0], [], []>} : vector<16x32xbf16>, vector<16x32xbf16>, vector<16x16xf32> -> vector<16x16xf32>
    %cst_20 = arith.constant 0.176776692 : f32
    %68 = vector.broadcast %cst_20 : f32 to vector<16x16xf32>
    %69 = arith.mulf %67, %68 : vector<16x16xf32>
    %70 = vector.broadcast %3 : vector<1x16xf32> to vector<16x16xf32>
    %71 = arith.addf %69, %70 : vector<16x16xf32>
    %cst_21 = arith.constant dense<0xFF800000> : vector<16xf32>
    %72 = vector.multi_reduction <maximumf>, %71, %cst_21 [1] : vector<16x16xf32> to vector<16xf32>
    %73 = vector.shape_cast %72 : vector<16xf32> to vector<16x1xf32>
    %74 = vector.broadcast %73 : vector<16x1xf32> to vector<16x16xf32>
    %75 = arith.subf %71, %74 : vector<16x16xf32>
    %76 = math.exp %75 : vector<16x16xf32>
    %cst_22 = arith.constant dense<0.000000e+00> : vector<16xf32>
    %77 = vector.multi_reduction <add>, %76, %cst_22 [1] : vector<16x16xf32> to vector<16xf32>
    %78 = vector.shape_cast %77 : vector<16xf32> to vector<16x1xf32>
    %79 = tpu.reciprocal %78 {approx = true} : vector<16x1xf32> -> vector<16x1xf32>
    %80 = vector.broadcast %79 : vector<16x1xf32> to vector<16x16xf32>
    %81 = arith.mulf %76, %80 : vector<16x16xf32>
    %82 = arith.truncf %81 : vector<16x16xf32> to vector<16x16xbf16>
    %cst_23 = arith.constant dense<0.000000e+00> : vector<16x32xf32>
    %83 = tpu.matmul %82, %66, %cst_23 {dimension_numbers = #tpu.dot_dimension_numbers<[1], [0], [0], [1], [0, 0, 1, 1], [], []>} : vector<16x16xbf16>, vector<16x32xbf16>, vector<16x32xf32> -> vector<16x32xf32>
    %84 = tpu.concatenate %23, %43, %63, %83 in 1 : vector<16x32xf32>, vector<16x32xf32>, vector<16x32xf32>, vector<16x32xf32> -> vector<16x128xf32>
    %85 = arith.truncf %84 : vector<16x128xf32> to vector<16x128xbf16>
    %c0_24 = arith.constant 0 : index
    %c0_25 = arith.constant 0 : index
    %c0_26 = arith.constant 0 : index
    %86 = vector.load %arg3[%c0_24, %c0_25, %c0_26] : memref<1x16x128xbf16, #tpu.memory_space<vmem>>, vector<1x16x128xbf16>
    %87 = vector.shape_cast %86 : vector<1x16x128xbf16> to vector<16x128xbf16>
    %88 = vector.shape_cast %85 : vector<16x128xbf16> to vector<1x16x128xbf16>
    tpu.vector_store %arg3[%c0_24, %c0_25, %c0_26], %88 {strides = array<i32>} : memref<1x16x128xbf16, #tpu.memory_space<vmem>>, vector<1x16x128xbf16>,
    return
  }
  func.func @transform_0(%arg0: i32) -> (i32, i32, i32) {
    %c0_i32 = arith.constant 0 : i32
    %c0_i32_0 = arith.constant 0 : i32
    %c0_i32_1 = arith.constant 0 : i32
    return %arg0, %c0_i32, %c0_i32_0 : i32, i32, i32
  }
  func.func @transform_1(%arg0: i32) -> (i32, i32, i32) {
    %c0_i32 = arith.constant 0 : i32
    %c0_i32_0 = arith.constant 0 : i32
    %c0_i32_1 = arith.constant 0 : i32
    return %arg0, %c0_i32, %c0_i32_0 : i32, i32, i32
  }
  func.func @transform_2(%arg0: i32) -> (i32, i32, i32) {
    %c0_i32 = arith.constant 0 : i32
    %c0_i32_0 = arith.constant 0 : i32
    %c0_i32_1 = arith.constant 0 : i32
    return %arg0, %c0_i32, %c0_i32_0 : i32, i32, i32
  }
}

module attributes {stable_mosaic.version = 11 : i64} {
  func.func @_layernorm_kernel(%arg0: i32, %arg1: memref<32x128xf32, #tpu.memory_space<vmem>>, %arg2: memref<1x128xf32, #tpu.memory_space<vmem>>, %arg3: memref<1x128xf32, #tpu.memory_space<vmem>>, %arg4: memref<32x128xbf16, #tpu.memory_space<vmem>>) attributes {dimension_semantics = [#tpu.dimension_semantics<parallel>], iteration_bounds = array<i64: 1>, scalar_prefetch = 0 : i64, scratch_operands = 0 : i64, tpu.core_type = #tpu.core_type<tc>, window_params = [{transform_indices = @transform_0, window_bounds = array<i64: 32, 128>}, {pipeline_mode = #tpu.pipeline_mode<synchronous>, transform_indices = @transform_1, window_bounds = array<i64: 1, 128>}, {pipeline_mode = #tpu.pipeline_mode<synchronous>, transform_indices = @transform_2, window_bounds = array<i64: 1, 128>}, {transform_indices = @transform_3, window_bounds = array<i64: 32, 128>}]} {
    %c0 = arith.constant 0 : index
    %c0_0 = arith.constant 0 : index
    %0 = vector.load %arg1[%c0, %c0_0] : memref<32x128xf32, #tpu.memory_space<vmem>>, vector<32x128xf32>
    %c0_1 = arith.constant 0 : index
    %c0_2 = arith.constant 0 : index
    %1 = vector.load %arg2[%c0_1, %c0_2] : memref<1x128xf32, #tpu.memory_space<vmem>>, vector<1x128xf32>
    %c0_3 = arith.constant 0 : index
    %c0_4 = arith.constant 0 : index
    %2 = vector.load %arg3[%c0_3, %c0_4] : memref<1x128xf32, #tpu.memory_space<vmem>>, vector<1x128xf32>
    %cst = arith.constant dense<0.000000e+00> : vector<32xf32>
    %3 = vector.multi_reduction <add>, %0, %cst [1] : vector<32x128xf32> to vector<32xf32>
    %4 = vector.shape_cast %3 : vector<32xf32> to vector<32x1xf32>
    %cst_5 = arith.constant 1.280000e+02 : f32
    %5 = vector.broadcast %cst_5 : f32 to vector<32x1xf32>
    %6 = arith.divf %4, %5 : vector<32x1xf32>
    %7 = vector.broadcast %6 : vector<32x1xf32> to vector<32x128xf32>
    %8 = arith.subf %0, %7 : vector<32x128xf32>
    %9 = arith.mulf %8, %8 : vector<32x128xf32>
    %cst_6 = arith.constant dense<0.000000e+00> : vector<32xf32>
    %10 = vector.multi_reduction <add>, %9, %cst_6 [1] : vector<32x128xf32> to vector<32xf32>
    %11 = vector.shape_cast %10 : vector<32xf32> to vector<32x1xf32>
    %cst_7 = arith.constant 1.280000e+02 : f32
    %12 = vector.broadcast %cst_7 : f32 to vector<32x1xf32>
    %13 = arith.divf %11, %12 : vector<32x1xf32>
    %cst_8 = arith.constant 9.99999996E-13 : f32
    %14 = vector.broadcast %cst_8 : f32 to vector<32x1xf32>
    %15 = arith.addf %13, %14 : vector<32x1xf32>
    %16 = math.rsqrt %15 : vector<32x1xf32>
    %17 = vector.broadcast %6 : vector<32x1xf32> to vector<32x128xf32>
    %18 = arith.subf %0, %17 : vector<32x128xf32>
    %19 = vector.broadcast %16 : vector<32x1xf32> to vector<32x128xf32>
    %20 = arith.mulf %18, %19 : vector<32x128xf32>
    %21 = vector.broadcast %1 : vector<1x128xf32> to vector<32x128xf32>
    %22 = arith.mulf %20, %21 : vector<32x128xf32>
    %23 = vector.broadcast %2 : vector<1x128xf32> to vector<32x128xf32>
    %24 = arith.addf %22, %23 : vector<32x128xf32>
    %25 = arith.truncf %24 : vector<32x128xf32> to vector<32x128xbf16>
    %c0_9 = arith.constant 0 : index
    %c0_10 = arith.constant 0 : index
    %26 = vector.load %arg4[%c0_9, %c0_10] : memref<32x128xbf16, #tpu.memory_space<vmem>>, vector<32x128xbf16>
    tpu.vector_store %arg4[%c0_9, %c0_10], %25 {strides = array<i32>} : memref<32x128xbf16, #tpu.memory_space<vmem>>, vector<32x128xbf16>,
    return
  }
  func.func @transform_0(%arg0: i32) -> (i32, i32) {
    %c0_i32 = arith.constant 0 : i32
    %c0_i32_0 = arith.constant 0 : i32
    return %arg0, %c0_i32 : i32, i32
  }
  func.func @transform_1(%arg0: i32) -> (i32, i32) {
    %c0_i32 = arith.constant 0 : i32
    %c0_i32_0 = arith.constant 0 : i32
    %c0_i32_1 = arith.constant 0 : i32
    return %c0_i32, %c0_i32_0 : i32, i32
  }
  func.func @transform_2(%arg0: i32) -> (i32, i32) {
    %c0_i32 = arith.constant 0 : i32
    %c0_i32_0 = arith.constant 0 : i32
    %c0_i32_1 = arith.constant 0 : i32
    return %c0_i32, %c0_i32_0 : i32, i32
  }
  func.func @transform_3(%arg0: i32) -> (i32, i32) {
    %c0_i32 = arith.constant 0 : i32
    %c0_i32_0 = arith.constant 0 : i32
    return %arg0, %c0_i32 : i32, i32
  }
}

module attributes {stable_mosaic.version = 11 : i64} {
  func.func @_matmul_kernel(%arg0: i32, %arg1: i32, %arg2: i32, %arg3: memref<32x128xbf16, #tpu.memory_space<vmem>>, %arg4: memref<128x384xbf16, #tpu.memory_space<vmem>>, %arg5: memref<1x384xf32, #tpu.memory_space<vmem>>, %arg6: memref<32x384xbf16, #tpu.memory_space<vmem>>, %arg7: memref<32x384xf32, #tpu.memory_space<vmem>>) attributes {dimension_semantics = [#tpu.dimension_semantics<parallel>, #tpu.dimension_semantics<parallel>, #tpu.dimension_semantics<arbitrary>], iteration_bounds = array<i64: 1, 1, 1>, scalar_prefetch = 0 : i64, scratch_operands = 1 : i64, tpu.core_type = #tpu.core_type<tc>, window_params = [{transform_indices = @transform_0, window_bounds = array<i64: 32, 128>}, {transform_indices = @transform_1, window_bounds = array<i64: 128, 384>}, {transform_indices = @transform_2, window_bounds = array<i64: 1, 384>}, {transform_indices = @transform_3, window_bounds = array<i64: 32, 384>}]} {
    %c0_i32 = arith.constant 0 : i32
    %0 = arith.cmpi eq, %arg2, %c0_i32 : i32
    %1 = arith.extui %0 : i1 to i32
    %c0_i32_0 = arith.constant 0 : i32
    %2 = arith.cmpi ne, %1, %c0_i32_0 : i32
    scf.if %2 {
      %cst_10 = arith.constant 0.000000e+00 : f32
      %12 = vector.broadcast %cst_10 : f32 to vector<32x384xf32>
      %c0_11 = arith.constant 0 : index
      %c0_12 = arith.constant 0 : index
      %13 = vector.load %arg7[%c0_11, %c0_12] : memref<32x384xf32, #tpu.memory_space<vmem>>, vector<32x384xf32>
      tpu.vector_store %arg7[%c0_11, %c0_12], %12 {strides = array<i32>} : memref<32x384xf32, #tpu.memory_space<vmem>>, vector<32x384xf32>,
    } else {
    }
    %c0 = arith.constant 0 : index
    %c0_1 = arith.constant 0 : index
    %3 = vector.load %arg7[%c0, %c0_1] : memref<32x384xf32, #tpu.memory_space<vmem>>, vector<32x384xf32>
    %c0_2 = arith.constant 0 : index
    %c0_3 = arith.constant 0 : index
    %4 = vector.load %arg3[%c0_2, %c0_3] : memref<32x128xbf16, #tpu.memory_space<vmem>>, vector<32x128xbf16>
    %c0_4 = arith.constant 0 : index
    %c0_5 = arith.constant 0 : index
    %5 = vector.load %arg4[%c0_4, %c0_5] : memref<128x384xbf16, #tpu.memory_space<vmem>>, vector<128x384xbf16>
    %cst = arith.constant dense<0.000000e+00> : vector<32x384xf32>
    %6 = tpu.matmul %4, %5, %cst {dimension_numbers = #tpu.dot_dimension_numbers<[1], [0], [0], [1], [0, 0, 1, 1], [], []>} : vector<32x128xbf16>, vector<128x384xbf16>, vector<32x384xf32> -> vector<32x384xf32>
    %7 = arith.addf %3, %6 : vector<32x384xf32>
    %c0_6 = arith.constant 0 : index
    %c0_7 = arith.constant 0 : index
    %8 = vector.load %arg7[%c0_6, %c0_7] : memref<32x384xf32, #tpu.memory_space<vmem>>, vector<32x384xf32>
    tpu.vector_store %arg7[%c0_6, %c0_7], %7 {strides = array<i32>} : memref<32x384xf32, #tpu.memory_space<vmem>>, vector<32x384xf32>,
    %c0_i32_8 = arith.constant 0 : i32
    %9 = arith.cmpi eq, %arg2, %c0_i32_8 : i32
    %10 = arith.extui %9 : i1 to i32
    %c0_i32_9 = arith.constant 0 : i32
    %11 = arith.cmpi ne, %10, %c0_i32_9 : i32
    scf.if %11 {
      %c0_10 = arith.constant 0 : index
      %c0_11 = arith.constant 0 : index
      %12 = vector.load %arg7[%c0_10, %c0_11] : memref<32x384xf32, #tpu.memory_space<vmem>>, vector<32x384xf32>
      %c0_12 = arith.constant 0 : index
      %c0_13 = arith.constant 0 : index
      %13 = vector.load %arg5[%c0_12, %c0_13] : memref<1x384xf32, #tpu.memory_space<vmem>>, vector<1x384xf32>
      %14 = vector.broadcast %13 : vector<1x384xf32> to vector<32x384xf32>
      %15 = arith.addf %12, %14 : vector<32x384xf32>
      %16 = arith.truncf %15 : vector<32x384xf32> to vector<32x384xbf16>
      %c0_14 = arith.constant 0 : index
      %c0_15 = arith.constant 0 : index
      %17 = vector.load %arg6[%c0_14, %c0_15] : memref<32x384xbf16, #tpu.memory_space<vmem>>, vector<32x384xbf16>
      tpu.vector_store %arg6[%c0_14, %c0_15], %16 {strides = array<i32>} : memref<32x384xbf16, #tpu.memory_space<vmem>>, vector<32x384xbf16>,
    } else {
    }
    return
  }
  func.func @transform_0(%arg0: i32, %arg1: i32, %arg2: i32) -> (i32, i32) {
    %c0_i32 = arith.constant 0 : i32
    return %arg0, %arg2 : i32, i32
  }
  func.func @transform_1(%arg0: i32, %arg1: i32, %arg2: i32) -> (i32, i32) {
    %c0_i32 = arith.constant 0 : i32
    return %arg2, %arg1 : i32, i32
  }
  func.func @transform_2(%arg0: i32, %arg1: i32, %arg2: i32) -> (i32, i32) {
    %c0_i32 = arith.constant 0 : i32
    %c0_i32_0 = arith.constant 0 : i32
    return %c0_i32, %arg1 : i32, i32
  }
  func.func @transform_3(%arg0: i32, %arg1: i32, %arg2: i32) -> (i32, i32) {
    %c0_i32 = arith.constant 0 : i32
    return %arg0, %arg1 : i32, i32
  }
}

module attributes {stable_mosaic.version = 11 : i64} {
  func.func @_matmul_ln_kernel(%arg0: i32, %arg1: i32, %arg2: memref<32x128xbf16, #tpu.memory_space<vmem>>, %arg3: memref<128x128xbf16, #tpu.memory_space<vmem>>, %arg4: memref<1x128xf32, #tpu.memory_space<vmem>>, %arg5: memref<32x128xbf16, #tpu.memory_space<vmem>>, %arg6: memref<1x128xf32, #tpu.memory_space<vmem>>, %arg7: memref<1x128xf32, #tpu.memory_space<vmem>>, %arg8: memref<32x128xbf16, #tpu.memory_space<vmem>>, %arg9: memref<32x128xf32, #tpu.memory_space<vmem>>) attributes {dimension_semantics = [#tpu.dimension_semantics<parallel>, #tpu.dimension_semantics<arbitrary>], iteration_bounds = array<i64: 1, 1>, scalar_prefetch = 0 : i64, scratch_operands = 1 : i64, tpu.core_type = #tpu.core_type<tc>, window_params = [{transform_indices = @transform_0, window_bounds = array<i64: 32, 128>}, {transform_indices = @transform_1, window_bounds = array<i64: 128, 128>}, {pipeline_mode = #tpu.pipeline_mode<synchronous>, transform_indices = @transform_2, window_bounds = array<i64: 1, 128>}, {transform_indices = @transform_3, window_bounds = array<i64: 32, 128>}, {pipeline_mode = #tpu.pipeline_mode<synchronous>, transform_indices = @transform_4, window_bounds = array<i64: 1, 128>}, {pipeline_mode = #tpu.pipeline_mode<synchronous>, transform_indices = @transform_5, window_bounds = array<i64: 1, 128>}, {transform_indices = @transform_6, window_bounds = array<i64: 32, 128>}]} {
    %c0_i32 = arith.constant 0 : i32
    %0 = arith.cmpi eq, %arg1, %c0_i32 : i32
    %1 = arith.extui %0 : i1 to i32
    %c0_i32_0 = arith.constant 0 : i32
    %2 = arith.cmpi ne, %1, %c0_i32_0 : i32
    scf.if %2 {
      %cst_10 = arith.constant 0.000000e+00 : f32
      %12 = vector.broadcast %cst_10 : f32 to vector<32x128xf32>
      %c0_11 = arith.constant 0 : index
      %c0_12 = arith.constant 0 : index
      %13 = vector.load %arg9[%c0_11, %c0_12] : memref<32x128xf32, #tpu.memory_space<vmem>>, vector<32x128xf32>
      tpu.vector_store %arg9[%c0_11, %c0_12], %12 {strides = array<i32>} : memref<32x128xf32, #tpu.memory_space<vmem>>, vector<32x128xf32>,
    } else {
    }
    %c0 = arith.constant 0 : index
    %c0_1 = arith.constant 0 : index
    %3 = vector.load %arg9[%c0, %c0_1] : memref<32x128xf32, #tpu.memory_space<vmem>>, vector<32x128xf32>
    %c0_2 = arith.constant 0 : index
    %c0_3 = arith.constant 0 : index
    %4 = vector.load %arg2[%c0_2, %c0_3] : memref<32x128xbf16, #tpu.memory_space<vmem>>, vector<32x128xbf16>
    %c0_4 = arith.constant 0 : index
    %c0_5 = arith.constant 0 : index
    %5 = vector.load %arg3[%c0_4, %c0_5] : memref<128x128xbf16, #tpu.memory_space<vmem>>, vector<128x128xbf16>
    %cst = arith.constant dense<0.000000e+00> : vector<32x128xf32>
    %6 = tpu.matmul %4, %5, %cst {dimension_numbers = #tpu.dot_dimension_numbers<[1], [0], [0], [1], [0, 0, 1, 1], [], []>} : vector<32x128xbf16>, vector<128x128xbf16>, vector<32x128xf32> -> vector<32x128xf32>
    %7 = arith.addf %3, %6 : vector<32x128xf32>
    %c0_6 = arith.constant 0 : index
    %c0_7 = arith.constant 0 : index
    %8 = vector.load %arg9[%c0_6, %c0_7] : memref<32x128xf32, #tpu.memory_space<vmem>>, vector<32x128xf32>
    tpu.vector_store %arg9[%c0_6, %c0_7], %7 {strides = array<i32>} : memref<32x128xf32, #tpu.memory_space<vmem>>, vector<32x128xf32>,
    %c0_i32_8 = arith.constant 0 : i32
    %9 = arith.cmpi eq, %arg1, %c0_i32_8 : i32
    %10 = arith.extui %9 : i1 to i32
    %c0_i32_9 = arith.constant 0 : i32
    %11 = arith.cmpi ne, %10, %c0_i32_9 : i32
    scf.if %11 {
      %c0_10 = arith.constant 0 : index
      %c0_11 = arith.constant 0 : index
      %12 = vector.load %arg9[%c0_10, %c0_11] : memref<32x128xf32, #tpu.memory_space<vmem>>, vector<32x128xf32>
      %c0_12 = arith.constant 0 : index
      %c0_13 = arith.constant 0 : index
      %13 = vector.load %arg4[%c0_12, %c0_13] : memref<1x128xf32, #tpu.memory_space<vmem>>, vector<1x128xf32>
      %14 = vector.broadcast %13 : vector<1x128xf32> to vector<32x128xf32>
      %15 = arith.addf %12, %14 : vector<32x128xf32>
      %c0_14 = arith.constant 0 : index
      %c0_15 = arith.constant 0 : index
      %16 = vector.load %arg5[%c0_14, %c0_15] : memref<32x128xbf16, #tpu.memory_space<vmem>>, vector<32x128xbf16>
      %17 = arith.extf %16 : vector<32x128xbf16> to vector<32x128xf32>
      %18 = arith.addf %15, %17 : vector<32x128xf32>
      %c0_16 = arith.constant 0 : index
      %c0_17 = arith.constant 0 : index
      %19 = vector.load %arg6[%c0_16, %c0_17] : memref<1x128xf32, #tpu.memory_space<vmem>>, vector<1x128xf32>
      %c0_18 = arith.constant 0 : index
      %c0_19 = arith.constant 0 : index
      %20 = vector.load %arg7[%c0_18, %c0_19] : memref<1x128xf32, #tpu.memory_space<vmem>>, vector<1x128xf32>
      %cst_20 = arith.constant dense<0.000000e+00> : vector<32xf32>
      %21 = vector.multi_reduction <add>, %18, %cst_20 [1] : vector<32x128xf32> to vector<32xf32>
      %22 = vector.shape_cast %21 : vector<32xf32> to vector<32x1xf32>
      %cst_21 = arith.constant 1.280000e+02 : f32
      %23 = vector.broadcast %cst_21 : f32 to vector<32x1xf32>
      %24 = arith.divf %22, %23 : vector<32x1xf32>
      %25 = vector.broadcast %24 : vector<32x1xf32> to vector<32x128xf32>
      %26 = arith.subf %18, %25 : vector<32x128xf32>
      %27 = arith.mulf %26, %26 : vector<32x128xf32>
      %cst_22 = arith.constant dense<0.000000e+00> : vector<32xf32>
      %28 = vector.multi_reduction <add>, %27, %cst_22 [1] : vector<32x128xf32> to vector<32xf32>
      %29 = vector.shape_cast %28 : vector<32xf32> to vector<32x1xf32>
      %cst_23 = arith.constant 1.280000e+02 : f32
      %30 = vector.broadcast %cst_23 : f32 to vector<32x1xf32>
      %31 = arith.divf %29, %30 : vector<32x1xf32>
      %cst_24 = arith.constant 9.99999996E-13 : f32
      %32 = vector.broadcast %cst_24 : f32 to vector<32x1xf32>
      %33 = arith.addf %31, %32 : vector<32x1xf32>
      %34 = math.rsqrt %33 : vector<32x1xf32>
      %35 = vector.broadcast %24 : vector<32x1xf32> to vector<32x128xf32>
      %36 = arith.subf %18, %35 : vector<32x128xf32>
      %37 = vector.broadcast %34 : vector<32x1xf32> to vector<32x128xf32>
      %38 = arith.mulf %36, %37 : vector<32x128xf32>
      %39 = vector.broadcast %19 : vector<1x128xf32> to vector<32x128xf32>
      %40 = arith.mulf %38, %39 : vector<32x128xf32>
      %41 = vector.broadcast %20 : vector<1x128xf32> to vector<32x128xf32>
      %42 = arith.addf %40, %41 : vector<32x128xf32>
      %43 = arith.truncf %42 : vector<32x128xf32> to vector<32x128xbf16>
      %c0_25 = arith.constant 0 : index
      %c0_26 = arith.constant 0 : index
      %44 = vector.load %arg8[%c0_25, %c0_26] : memref<32x128xbf16, #tpu.memory_space<vmem>>, vector<32x128xbf16>
      tpu.vector_store %arg8[%c0_25, %c0_26], %43 {strides = array<i32>} : memref<32x128xbf16, #tpu.memory_space<vmem>>, vector<32x128xbf16>,
    } else {
    }
    return
  }
  func.func @transform_0(%arg0: i32, %arg1: i32) -> (i32, i32) {
    %c0_i32 = arith.constant 0 : i32
    return %arg0, %arg1 : i32, i32
  }
  func.func @transform_1(%arg0: i32, %arg1: i32) -> (i32, i32) {
    %c0_i32 = arith.constant 0 : i32
    %c0_i32_0 = arith.constant 0 : i32
    return %arg1, %c0_i32 : i32, i32
  }
  func.func @transform_2(%arg0: i32, %arg1: i32) -> (i32, i32) {
    %c0_i32 = arith.constant 0 : i32
    %c0_i32_0 = arith.constant 0 : i32
    %c0_i32_1 = arith.constant 0 : i32
    return %c0_i32, %c0_i32_0 : i32, i32
  }
  func.func @transform_3(%arg0: i32, %arg1: i32) -> (i32, i32) {
    %c0_i32 = arith.constant 0 : i32
    %c0_i32_0 = arith.constant 0 : i32
    return %arg0, %c0_i32 : i32, i32
  }
  func.func @transform_4(%arg0: i32, %arg1: i32) -> (i32, i32) {
    %c0_i32 = arith.constant 0 : i32
    %c0_i32_0 = arith.constant 0 : i32
    %c0_i32_1 = arith.constant 0 : i32
    return %c0_i32, %c0_i32_0 : i32, i32
  }
  func.func @transform_5(%arg0: i32, %arg1: i32) -> (i32, i32) {
    %c0_i32 = arith.constant 0 : i32
    %c0_i32_0 = arith.constant 0 : i32
    %c0_i32_1 = arith.constant 0 : i32
    return %c0_i32, %c0_i32_0 : i32, i32
  }
  func.func @transform_6(%arg0: i32, %arg1: i32) -> (i32, i32) {
    %c0_i32 = arith.constant 0 : i32
    %c0_i32_0 = arith.constant 0 : i32
    return %arg0, %c0_i32 : i32, i32
  }
}

module attributes {stable_mosaic.version = 11 : i64} {
  func.func @_matmul_ln_kernel(%arg0: i32, %arg1: i32, %arg2: memref<32x256xbf16, #tpu.memory_space<vmem>>, %arg3: memref<256x128xbf16, #tpu.memory_space<vmem>>, %arg4: memref<1x128xf32, #tpu.memory_space<vmem>>, %arg5: memref<32x128xbf16, #tpu.memory_space<vmem>>, %arg6: memref<1x128xf32, #tpu.memory_space<vmem>>, %arg7: memref<1x128xf32, #tpu.memory_space<vmem>>, %arg8: memref<32x128xbf16, #tpu.memory_space<vmem>>, %arg9: memref<32x128xf32, #tpu.memory_space<vmem>>) attributes {dimension_semantics = [#tpu.dimension_semantics<parallel>, #tpu.dimension_semantics<arbitrary>], iteration_bounds = array<i64: 1, 1>, scalar_prefetch = 0 : i64, scratch_operands = 1 : i64, tpu.core_type = #tpu.core_type<tc>, window_params = [{transform_indices = @transform_0, window_bounds = array<i64: 32, 256>}, {transform_indices = @transform_1, window_bounds = array<i64: 256, 128>}, {pipeline_mode = #tpu.pipeline_mode<synchronous>, transform_indices = @transform_2, window_bounds = array<i64: 1, 128>}, {transform_indices = @transform_3, window_bounds = array<i64: 32, 128>}, {pipeline_mode = #tpu.pipeline_mode<synchronous>, transform_indices = @transform_4, window_bounds = array<i64: 1, 128>}, {pipeline_mode = #tpu.pipeline_mode<synchronous>, transform_indices = @transform_5, window_bounds = array<i64: 1, 128>}, {transform_indices = @transform_6, window_bounds = array<i64: 32, 128>}]} {
    %c0_i32 = arith.constant 0 : i32
    %0 = arith.cmpi eq, %arg1, %c0_i32 : i32
    %1 = arith.extui %0 : i1 to i32
    %c0_i32_0 = arith.constant 0 : i32
    %2 = arith.cmpi ne, %1, %c0_i32_0 : i32
    scf.if %2 {
      %cst_10 = arith.constant 0.000000e+00 : f32
      %12 = vector.broadcast %cst_10 : f32 to vector<32x128xf32>
      %c0_11 = arith.constant 0 : index
      %c0_12 = arith.constant 0 : index
      %13 = vector.load %arg9[%c0_11, %c0_12] : memref<32x128xf32, #tpu.memory_space<vmem>>, vector<32x128xf32>
      tpu.vector_store %arg9[%c0_11, %c0_12], %12 {strides = array<i32>} : memref<32x128xf32, #tpu.memory_space<vmem>>, vector<32x128xf32>,
    } else {
    }
    %c0 = arith.constant 0 : index
    %c0_1 = arith.constant 0 : index
    %3 = vector.load %arg9[%c0, %c0_1] : memref<32x128xf32, #tpu.memory_space<vmem>>, vector<32x128xf32>
    %c0_2 = arith.constant 0 : index
    %c0_3 = arith.constant 0 : index
    %4 = vector.load %arg2[%c0_2, %c0_3] : memref<32x256xbf16, #tpu.memory_space<vmem>>, vector<32x256xbf16>
    %c0_4 = arith.constant 0 : index
    %c0_5 = arith.constant 0 : index
    %5 = vector.load %arg3[%c0_4, %c0_5] : memref<256x128xbf16, #tpu.memory_space<vmem>>, vector<256x128xbf16>
    %cst = arith.constant dense<0.000000e+00> : vector<32x128xf32>
    %6 = tpu.matmul %4, %5, %cst {dimension_numbers = #tpu.dot_dimension_numbers<[1], [0], [0], [1], [0, 0, 1, 1], [], []>} : vector<32x256xbf16>, vector<256x128xbf16>, vector<32x128xf32> -> vector<32x128xf32>
    %7 = arith.addf %3, %6 : vector<32x128xf32>
    %c0_6 = arith.constant 0 : index
    %c0_7 = arith.constant 0 : index
    %8 = vector.load %arg9[%c0_6, %c0_7] : memref<32x128xf32, #tpu.memory_space<vmem>>, vector<32x128xf32>
    tpu.vector_store %arg9[%c0_6, %c0_7], %7 {strides = array<i32>} : memref<32x128xf32, #tpu.memory_space<vmem>>, vector<32x128xf32>,
    %c0_i32_8 = arith.constant 0 : i32
    %9 = arith.cmpi eq, %arg1, %c0_i32_8 : i32
    %10 = arith.extui %9 : i1 to i32
    %c0_i32_9 = arith.constant 0 : i32
    %11 = arith.cmpi ne, %10, %c0_i32_9 : i32
    scf.if %11 {
      %c0_10 = arith.constant 0 : index
      %c0_11 = arith.constant 0 : index
      %12 = vector.load %arg9[%c0_10, %c0_11] : memref<32x128xf32, #tpu.memory_space<vmem>>, vector<32x128xf32>
      %c0_12 = arith.constant 0 : index
      %c0_13 = arith.constant 0 : index
      %13 = vector.load %arg4[%c0_12, %c0_13] : memref<1x128xf32, #tpu.memory_space<vmem>>, vector<1x128xf32>
      %14 = vector.broadcast %13 : vector<1x128xf32> to vector<32x128xf32>
      %15 = arith.addf %12, %14 : vector<32x128xf32>
      %c0_14 = arith.constant 0 : index
      %c0_15 = arith.constant 0 : index
      %16 = vector.load %arg5[%c0_14, %c0_15] : memref<32x128xbf16, #tpu.memory_space<vmem>>, vector<32x128xbf16>
      %17 = arith.extf %16 : vector<32x128xbf16> to vector<32x128xf32>
      %18 = arith.addf %15, %17 : vector<32x128xf32>
      %c0_16 = arith.constant 0 : index
      %c0_17 = arith.constant 0 : index
      %19 = vector.load %arg6[%c0_16, %c0_17] : memref<1x128xf32, #tpu.memory_space<vmem>>, vector<1x128xf32>
      %c0_18 = arith.constant 0 : index
      %c0_19 = arith.constant 0 : index
      %20 = vector.load %arg7[%c0_18, %c0_19] : memref<1x128xf32, #tpu.memory_space<vmem>>, vector<1x128xf32>
      %cst_20 = arith.constant dense<0.000000e+00> : vector<32xf32>
      %21 = vector.multi_reduction <add>, %18, %cst_20 [1] : vector<32x128xf32> to vector<32xf32>
      %22 = vector.shape_cast %21 : vector<32xf32> to vector<32x1xf32>
      %cst_21 = arith.constant 1.280000e+02 : f32
      %23 = vector.broadcast %cst_21 : f32 to vector<32x1xf32>
      %24 = arith.divf %22, %23 : vector<32x1xf32>
      %25 = vector.broadcast %24 : vector<32x1xf32> to vector<32x128xf32>
      %26 = arith.subf %18, %25 : vector<32x128xf32>
      %27 = arith.mulf %26, %26 : vector<32x128xf32>
      %cst_22 = arith.constant dense<0.000000e+00> : vector<32xf32>
      %28 = vector.multi_reduction <add>, %27, %cst_22 [1] : vector<32x128xf32> to vector<32xf32>
      %29 = vector.shape_cast %28 : vector<32xf32> to vector<32x1xf32>
      %cst_23 = arith.constant 1.280000e+02 : f32
      %30 = vector.broadcast %cst_23 : f32 to vector<32x1xf32>
      %31 = arith.divf %29, %30 : vector<32x1xf32>
      %cst_24 = arith.constant 9.99999996E-13 : f32
      %32 = vector.broadcast %cst_24 : f32 to vector<32x1xf32>
      %33 = arith.addf %31, %32 : vector<32x1xf32>
      %34 = math.rsqrt %33 : vector<32x1xf32>
      %35 = vector.broadcast %24 : vector<32x1xf32> to vector<32x128xf32>
      %36 = arith.subf %18, %35 : vector<32x128xf32>
      %37 = vector.broadcast %34 : vector<32x1xf32> to vector<32x128xf32>
      %38 = arith.mulf %36, %37 : vector<32x128xf32>
      %39 = vector.broadcast %19 : vector<1x128xf32> to vector<32x128xf32>
      %40 = arith.mulf %38, %39 : vector<32x128xf32>
      %41 = vector.broadcast %20 : vector<1x128xf32> to vector<32x128xf32>
      %42 = arith.addf %40, %41 : vector<32x128xf32>
      %43 = arith.truncf %42 : vector<32x128xf32> to vector<32x128xbf16>
      %c0_25 = arith.constant 0 : index
      %c0_26 = arith.constant 0 : index
      %44 = vector.load %arg8[%c0_25, %c0_26] : memref<32x128xbf16, #tpu.memory_space<vmem>>, vector<32x128xbf16>
      tpu.vector_store %arg8[%c0_25, %c0_26], %43 {strides = array<i32>} : memref<32x128xbf16, #tpu.memory_space<vmem>>, vector<32x128xbf16>,
    } else {
    }
    return
  }
  func.func @transform_0(%arg0: i32, %arg1: i32) -> (i32, i32) {
    %c0_i32 = arith.constant 0 : i32
    return %arg0, %arg1 : i32, i32
  }
  func.func @transform_1(%arg0: i32, %arg1: i32) -> (i32, i32) {
    %c0_i32 = arith.constant 0 : i32
    %c0_i32_0 = arith.constant 0 : i32
    return %arg1, %c0_i32 : i32, i32
  }
  func.func @transform_2(%arg0: i32, %arg1: i32) -> (i32, i32) {
    %c0_i32 = arith.constant 0 : i32
    %c0_i32_0 = arith.constant 0 : i32
    %c0_i32_1 = arith.constant 0 : i32
    return %c0_i32, %c0_i32_0 : i32, i32
  }
  func.func @transform_3(%arg0: i32, %arg1: i32) -> (i32, i32) {
    %c0_i32 = arith.constant 0 : i32
    %c0_i32_0 = arith.constant 0 : i32
    return %arg0, %c0_i32 : i32, i32
  }
  func.func @transform_4(%arg0: i32, %arg1: i32) -> (i32, i32) {
    %c0_i32 = arith.constant 0 : i32
    %c0_i32_0 = arith.constant 0 : i32
    %c0_i32_1 = arith.constant 0 : i32
    return %c0_i32, %c0_i32_0 : i32, i32
  }
  func.func @transform_5(%arg0: i32, %arg1: i32) -> (i32, i32) {
    %c0_i32 = arith.constant 0 : i32
    %c0_i32_0 = arith.constant 0 : i32
    %c0_i32_1 = arith.constant 0 : i32
    return %c0_i32, %c0_i32_0 : i32, i32
  }
  func.func @transform_6(%arg0: i32, %arg1: i32) -> (i32, i32) {
    %c0_i32 = arith.constant 0 : i32
    %c0_i32_0 = arith.constant 0 : i32
    return %arg0, %c0_i32 : i32, i32
  }
}

module attributes {stable_mosaic.version = 11 : i64} {
  func.func @_matmul_kernel(%arg0: i32, %arg1: i32, %arg2: i32, %arg3: memref<32x128xbf16, #tpu.memory_space<vmem>>, %arg4: memref<128x256xbf16, #tpu.memory_space<vmem>>, %arg5: memref<1x256xf32, #tpu.memory_space<vmem>>, %arg6: memref<32x256xbf16, #tpu.memory_space<vmem>>, %arg7: memref<32x256xf32, #tpu.memory_space<vmem>>) attributes {dimension_semantics = [#tpu.dimension_semantics<parallel>, #tpu.dimension_semantics<parallel>, #tpu.dimension_semantics<arbitrary>], iteration_bounds = array<i64: 1, 1, 1>, scalar_prefetch = 0 : i64, scratch_operands = 1 : i64, tpu.core_type = #tpu.core_type<tc>, window_params = [{transform_indices = @transform_0, window_bounds = array<i64: 32, 128>}, {transform_indices = @transform_1, window_bounds = array<i64: 128, 256>}, {transform_indices = @transform_2, window_bounds = array<i64: 1, 256>}, {transform_indices = @transform_3, window_bounds = array<i64: 32, 256>}]} {
    %c0_i32 = arith.constant 0 : i32
    %0 = arith.cmpi eq, %arg2, %c0_i32 : i32
    %1 = arith.extui %0 : i1 to i32
    %c0_i32_0 = arith.constant 0 : i32
    %2 = arith.cmpi ne, %1, %c0_i32_0 : i32
    scf.if %2 {
      %cst_10 = arith.constant 0.000000e+00 : f32
      %12 = vector.broadcast %cst_10 : f32 to vector<32x256xf32>
      %c0_11 = arith.constant 0 : index
      %c0_12 = arith.constant 0 : index
      %13 = vector.load %arg7[%c0_11, %c0_12] : memref<32x256xf32, #tpu.memory_space<vmem>>, vector<32x256xf32>
      tpu.vector_store %arg7[%c0_11, %c0_12], %12 {strides = array<i32>} : memref<32x256xf32, #tpu.memory_space<vmem>>, vector<32x256xf32>,
    } else {
    }
    %c0 = arith.constant 0 : index
    %c0_1 = arith.constant 0 : index
    %3 = vector.load %arg7[%c0, %c0_1] : memref<32x256xf32, #tpu.memory_space<vmem>>, vector<32x256xf32>
    %c0_2 = arith.constant 0 : index
    %c0_3 = arith.constant 0 : index
    %4 = vector.load %arg3[%c0_2, %c0_3] : memref<32x128xbf16, #tpu.memory_space<vmem>>, vector<32x128xbf16>
    %c0_4 = arith.constant 0 : index
    %c0_5 = arith.constant 0 : index
    %5 = vector.load %arg4[%c0_4, %c0_5] : memref<128x256xbf16, #tpu.memory_space<vmem>>, vector<128x256xbf16>
    %cst = arith.constant dense<0.000000e+00> : vector<32x256xf32>
    %6 = tpu.matmul %4, %5, %cst {dimension_numbers = #tpu.dot_dimension_numbers<[1], [0], [0], [1], [0, 0, 1, 1], [], []>} : vector<32x128xbf16>, vector<128x256xbf16>, vector<32x256xf32> -> vector<32x256xf32>
    %7 = arith.addf %3, %6 : vector<32x256xf32>
    %c0_6 = arith.constant 0 : index
    %c0_7 = arith.constant 0 : index
    %8 = vector.load %arg7[%c0_6, %c0_7] : memref<32x256xf32, #tpu.memory_space<vmem>>, vector<32x256xf32>
    tpu.vector_store %arg7[%c0_6, %c0_7], %7 {strides = array<i32>} : memref<32x256xf32, #tpu.memory_space<vmem>>, vector<32x256xf32>,
    %c0_i32_8 = arith.constant 0 : i32
    %9 = arith.cmpi eq, %arg2, %c0_i32_8 : i32
    %10 = arith.extui %9 : i1 to i32
    %c0_i32_9 = arith.constant 0 : i32
    %11 = arith.cmpi ne, %10, %c0_i32_9 : i32
    scf.if %11 {
      %c0_10 = arith.constant 0 : index
      %c0_11 = arith.constant 0 : index
      %12 = vector.load %arg7[%c0_10, %c0_11] : memref<32x256xf32, #tpu.memory_space<vmem>>, vector<32x256xf32>
      %c0_12 = arith.constant 0 : index
      %c0_13 = arith.constant 0 : index
      %13 = vector.load %arg5[%c0_12, %c0_13] : memref<1x256xf32, #tpu.memory_space<vmem>>, vector<1x256xf32>
      %14 = vector.broadcast %13 : vector<1x256xf32> to vector<32x256xf32>
      %15 = arith.addf %12, %14 : vector<32x256xf32>
      %cst_14 = arith.constant 5.000000e-01 : f32
      %16 = vector.broadcast %cst_14 : f32 to vector<32x256xf32>
      %17 = arith.mulf %16, %15 : vector<32x256xf32>
      %cst_15 = arith.constant 4.471500e-02 : f32
      %18 = vector.broadcast %cst_15 : f32 to vector<32x256xf32>
      %19 = arith.mulf %18, %15 : vector<32x256xf32>
      %20 = arith.mulf %19, %15 : vector<32x256xf32>
      %21 = arith.mulf %20, %15 : vector<32x256xf32>
      %22 = arith.addf %15, %21 : vector<32x256xf32>
      %cst_16 = arith.constant 0.797884583 : f32
      %23 = vector.broadcast %cst_16 : f32 to vector<32x256xf32>
      %24 = arith.mulf %23, %22 : vector<32x256xf32>
      %25 = math.tanh %24 : vector<32x256xf32>
      %cst_17 = arith.constant 1.000000e+00 : f32
      %26 = vector.broadcast %cst_17 : f32 to vector<32x256xf32>
      %27 = arith.addf %26, %25 : vector<32x256xf32>
      %28 = arith.mulf %17, %27 : vector<32x256xf32>
      %29 = arith.truncf %28 : vector<32x256xf32> to vector<32x256xbf16>
      %c0_18 = arith.constant 0 : index
      %c0_19 = arith.constant 0 : index
      %30 = vector.load %arg6[%c0_18, %c0_19] : memref<32x256xbf16, #tpu.memory_space<vmem>>, vector<32x256xbf16>
      tpu.vector_store %arg6[%c0_18, %c0_19], %29 {strides = array<i32>} : memref<32x256xbf16, #tpu.memory_space<vmem>>, vector<32x256xbf16>,
    } else {
    }
    return
  }
  func.func @transform_0(%arg0: i32, %arg1: i32, %arg2: i32) -> (i32, i32) {
    %c0_i32 = arith.constant 0 : i32
    return %arg0, %arg2 : i32, i32
  }
  func.func @transform_1(%arg0: i32, %arg1: i32, %arg2: i32) -> (i32, i32) {
    %c0_i32 = arith.constant 0 : i32
    return %arg2, %arg1 : i32, i32
  }
  func.func @transform_2(%arg0: i32, %arg1: i32, %arg2: i32) -> (i32, i32) {
    %c0_i32 = arith.constant 0 : i32
    %c0_i32_0 = arith.constant 0 : i32
    return %c0_i32, %arg1 : i32, i32
  }
  func.func @transform_3(%arg0: i32, %arg1: i32, %arg2: i32) -> (i32, i32) {
    %c0_i32 = arith.constant 0 : i32
    return %arg0, %arg1 : i32, i32
  }
}

</mosaic_0001>

<bundles_post_ra>
// kernel: bert_y_forward.16
= control target key start
LH: loop header
LB: loop body
LE: loop exit
PB: predicated region body
PF: predicated region fallthrough
CT: control target
= control target key end

     0   :  { %s182_s0 = inlined_call_operand.vmem [shape: f32[32,128], index: 0, kind: input, shape index: {}]   ;;  %s183_s1 = inlined_call_operand.vmem [shape: f32[1,128], index: 1, kind: input, shape index: {}]   ;;  %s184_s2 = inlined_call_operand.vmem [shape: f32[1,128], index: 2, kind: input, shape index: {}]   ;;  %s185_s3 = inlined_call_operand.vmem [shape: bf16[32,128], index: 3, kind: output, shape index: {}]  }
   0x1   :  { %v14_v0 = vld [vmem:[%s182_s0] sm:$0xff]  ;;  %v16_v1 = vld [vmem:[%s182_s0 + $0x10] sm:$0xff]  ;;  %v15_v2 = vld [vmem:[%s182_s0 + $0x8] sm:$0xff] }
   0x2   :  { %20 = vadd.xlane.f32.xlu0 %v14_v0  ;;  %24 = vadd.xlane.f32.xlu1 %v16_v1  ;;  %v17_v3 = vld [vmem:[%s182_s0 + $0x18] sm:$0xff]  ;;  %v109_v34 = vld [vmem:[%s183_s1] ss:$0 sm:$0xff] }
   0x3   :  { %v110_v39 = vld [vmem:[%s184_s2] ss:$0 sm:$0xff] }
   0x6   :  { %22 = vadd.xlane.f32.xlu0 %v15_v2  ;;  %26 = vadd.xlane.f32.xlu1 %v17_v3 }
  0x8f   :  { %v21_v4 = vpop.xlane.xlu0 %20  ;;  %v25_v5 = vpop.xlane.xlu1 %24 }
  0x90   :  { %v29_v6 = vmul.f32 0.0078125, %v21_v4  ;;  %v31_v7 = vmul.f32 0.0078125, %v25_v5 }
  0x92   :  { %v33_v8 = vsub.f32 %v14_v0, %v29_v6  ;;  %v35_v9 = vsub.f32 %v16_v1, %v31_v7 }
  0x93   :  { %v23_v10 = vpop.xlane.xlu0 %22  ;;  %v27_v11 = vpop.xlane.xlu1 %26 }
  0x94   :  { %v30_v12 = vmul.f32 0.0078125, %v23_v10  ;;  %v37_v13 = vmul.f32 %v33_v8, %v33_v8  ;;  %v32_v14 = vmul.f32 0.0078125, %v27_v11  ;;  %v39_v17 = vmul.f32 %v35_v9, %v35_v9 }
  0x96   :  { %v34_v15 = vsub.f32 %v15_v2, %v30_v12  ;;  %41 = vadd.xlane.f32.xlu0 %v37_v13  ;;  %v36_v16 = vsub.f32 %v17_v3, %v32_v14 }
  0x98   :  { %v38_v18 = vmul.f32 %v34_v15, %v34_v15  ;;  %v40_v19 = vmul.f32 %v36_v16, %v36_v16 }
  0x9a   :  { %45 = vadd.xlane.f32.xlu0 %v39_v17  ;;  %43 = vadd.xlane.f32.xlu1 %v38_v18 }
  0x9e   :  { %47 = vadd.xlane.f32.xlu1 %v40_v19 }
 0x123   :  { %v42_v20 = vpop.xlane.xlu0 %41 }
 0x124   :  { %v49_v21 = vmul.f32 0.0078125, %v42_v20 }
 0x126   :  { %v53_v22 = vadd.f32 1e-12, %v49_v21 }
 0x127   :  { %v44_v23 = vpop.xlane.xlu1 %43  ;;  %v46_v24 = vpop.xlane.xlu0 %45 }
 0x128   :  { %130 = vrsqrt.f32 %v53_v22  ;;  %v50_v25 = vmul.f32 0.0078125, %v44_v23  ;;  %v51_v26 = vmul.f32 0.0078125, %v46_v24 }
 0x12a   :  { %v54_v27 = vadd.f32 1e-12, %v50_v25  ;;  %v55_v28 = vadd.f32 1e-12, %v51_v26 }
 0x12b   :  { %v48_v29 = vpop.xlane.xlu1 %47 }
 0x12c   :  { %132 = vrsqrt.f32 %v54_v27  ;;  %v52_v30 = vmul.f32 0.0078125, %v48_v29 }
 0x12d   :  { %134 = vrsqrt.f32 %v55_v28 }
 0x12e   :  { %v56_v31 = vadd.f32 1e-12, %v52_v30 }
 0x130   :  { %136 = vrsqrt.f32 %v56_v31 }
 0x132   :  { %v131_v32 = vpop.eup %130 }
 0x133   :  { %v61_v33 = vmul.f32 %v131_v32, %v33_v8 }
 0x135   :  { %v71_v37 = vmul.f32 %v109_v34, %v61_v33 }
 0x136   :  { %v133_v35 = vpop.eup %132 }
 0x137   :  { %v135_v36 = vpop.eup %134  ;;  %v62_v38 = vmul.f32 %v133_v35, %v34_v15  ;;  %v81_v43 = vadd.f32 %v110_v39, %v71_v37 }
 0x138   :  { %v63_v40 = vmul.f32 %v135_v36, %v35_v9 }
 0x139   :  { %v72_v41 = vmul.f32 %v109_v34, %v62_v38 }
 0x13a   :  { %v137_v42 = vpop.eup %136  ;;  %v73_v45 = vmul.f32 %v109_v34, %v63_v40 }
 0x13b   :  { %v82_v44 = vadd.f32 %v110_v39, %v72_v41  ;;  %v64_v46 = vmul.f32 %v137_v42, %v36_v16 }
 0x13c   :  { %v83_v49 = vadd.f32 %v110_v39, %v73_v45 }
 0x13d   :  { %v122_v47 = vpack.c.bf16 %v82_v44, %v81_v43  ;;  %v74_v48 = vmul.f32 %v109_v34, %v64_v46 }
 0x13f   :  { %123 = vst [vmem:[%s185_s3] sm:$0xff] %v122_v47   ;;  %v84_v50 = vadd.f32 %v110_v39, %v74_v48 }
 0x141   :  { %v127_v51 = vpack.c.bf16 %v84_v50, %v83_v49 }
 0x143   :  { %129 = vst [vmem:[%s185_s3 + $0x8] sm:$0xff] %v127_v51  }

// kernel: bert_y_forward.18
= control target key start
LH: loop header
LB: loop body
LE: loop exit
PB: predicated region body
PF: predicated region fallthrough
CT: control target
= control target key end

     0   :  { %7 = vsyncpa [#allocation3], 0  ;;  %s1529_s0 = inlined_call_operand.hbm [shape: bf16[2,16,384], index: 0, kind: input, shape index: {}]   ;;  %s1530_s1 = inlined_call_operand.hbm [shape: f32[2,1,16], index: 1, kind: input, shape index: {}]   ;;  %s1531_s2 = inlined_call_operand.hbm [shape: bf16[2,16,128], index: 2, kind: output, shape index: {}]  }
   0x1   :  { %9 = vsyncpa [#allocation3 + $0x1], 0 }
   0x2   :  { %10 = vsyncpa [#allocation6], 0 }
   0x3   :  { %12 = vsyncpa [#allocation6 + $0x1], 0 }
   0x4   :  { %13 = vsyncpa [#allocation4], 0 }
   0x5   :  { %15 = vsyncpa [#allocation4 + $0x1], 0  ;;  %s1235_s9 = smov 0   ;;  %s1237_s10 = smov 0  }
   0x6   :  { %s1239_s11 = smov 0   ;;  %s1241_s12 = smov 0  }
   0x7 LB: > { %s1256_s13 = sadd.s32 4294967295, %s1207_s12   ;;  %s866_s14 = sadd.s32 4294967294, %s1207_s12   ;;  %s1207_s12 = sphi %s1241_s12, %s1547_s12   ;;  %s1203_s11 = sphi %s1239_s11, %s1546_s11   ;;  %s1199_s10 = sphi %s1237_s10, %s1545_s10   ;;  %s1195_s9 = sphi %s1235_s9, %s1544_s9  }
   0x8   : > { %s1260_s15 = sadd.s32 1, %s1207_s12   ;;  %s28_s16 = sadd.s32 1, %s1203_s11 }
   0x9   : > { %s25_s17 = ssub.s32 %s1207_s12, %s1260_s15  ;;  %p35_p0 = scmp.ne.s32.totalorder %s1203_s11, %s1199_s10 }
   0xa   : > { %p26_p1 = scmp.eq.s32.totalorder %s25_s17, 0  ;;  %p36_p2 = scmp.eq.s32.totalorder %s1207_s12, 0 }
   0xb   : > { %p41_p3 = scmp.ne.s32.totalorder %s1199_s10, %s1195_s9  ;;  %p42_p4 = scmp.eq.s32.totalorder %s1256_s13, 0 }
   0xc   : > { %s1272_s18 = scalar_select %p26_p1, %s1203_s11, %s28_s16  }
   0xd   : > { %p37_p5 = por %p36_p2, %p35_p0  ;;  %p1274_p6 = por %p42_p4, %p41_p3 }
   0xe   : > { %p91_p7 = scmp.eq.s32.totalorder %s1256_s13, 1  ;;  %p97_p8 = scmp.eq.s32.totalorder %s866_s14, 1 }
   0xf   : > { %s1534_s19 = scalar_select %p1274_p6, 1, 0 }
  0x10   : > { %p984_p10 = scmp.lt.s32.totalorder %s1207_s12, 2  ;;  %p1281_p11 = por %p91_p7, %p35_p0 }
  0x11   : > { %p1285_p12 = por %p97_p8, %p41_p3  ;;  %s1290_s22 = sand.u32 1, %s1203_s11  }
  0x12   : > { %s1535_s20 = scalar_select %p1281_p11, 1, 0 }
  0x13   : > { %s1536_s21 = scalar_select %p1285_p12, 1, 0 }
  0x14   : > { %s965_s23 = smul.u32 384, %s1207_s12  ;;  %p1299_p13 = pnand %p984_p10, %p37_p5 }
  0x15   : > { %s964_s24 = smul.u32 24, %s1290_s22  ;;  %s118_s3 = scalar_lea.sflag [#allocation3], %s1290_s22 }
  0x16   : > { %s1297_s27 = scalar_lea.hbm %s1529_s0, %s965_s23  ;;  %p1079_p1 = pneg %p1299_p13 }
  0x17   : > { %s121_s29 = scalar_lea.vmem [#allocation2], %s964_s24  ;;  %s1077_s4 = scalar_lea.hbm %s1297_s27, 384 }
  0x18   : > { %s128_s30 = sshll.u32 %s121_s29, 4  ;;  %p1078_p0 = scmp.ne.s32.totalorder %s1297_s27, %s1077_s4  ;;  %s1303_s30 = int_to_ptr.vmem [resolvable:$true] %s128_s30 }
  0x19   : > { %s1082_s7 = scalar_lea.hbm %s1529_s0, 768  ;;  %p1083_p4 = scmp.lt.u32.totalorder %s1297_s27, %s1529_s0 }
  0x1a   : > { %p1080_p2 = pnand %p1079_p1, %p1078_p0  ;;  %p1084_p5 = scmp.lt.u32.totalorder %s1082_s7, %s1077_s4 }
  0x1b   : > { %p1086_p8 = scmp.lt.u32.totalorder %s1077_s4, %s1297_s27 }
  0x1c   : > { %p1081_p3 = pneg %p1080_p2  ;;  %p1085_p7 = por %p1084_p5, %p1083_p4 }
  0x1e   : > { %p1087_p10 = por %p1086_p8, %p1085_p7 }
  0x20   : > { %p1088_p9 = pnand %p1087_p10, %p1081_p3 }
  0x22   : > { %1091 = shalt.err (!%p1088_p9)
}
  0x23   : > { %s1092_s16 = scalar_lea.vmem %s1303_s30, 384  ;;  %s1209_s17 = smov [#allocation2]  }
  0x24   : > { %p1093_p0 = scmp.ne.s32.totalorder %s1303_s30, %s1092_s16  ;;  %s1097_s23 = sshll.u32 %s1209_s17, 4  ;;  %s1098_s23 = int_to_ptr.vmem [resolvable:$false] %s1097_s23 }
  0x25   : > { %s1099_s24 = scalar_lea.vmem %s1098_s23, 768  ;;  %p1100_p11 = scmp.lt.s32.totalorder %s1303_s30, %s1098_s23 }
  0x26   : > { %p1095_p2 = pnand %p1093_p0, %p1079_p1  ;;  %p1101_p4 = scmp.lt.s32.totalorder %s1099_s24, %s1092_s16 }
  0x28   : > { %p1096_p12 = pneg %p1095_p2  ;;  %p1102_p5 = por %p1101_p4, %p1100_p11 }
  0x2a   : > { %p1103_p7 = pnand %p1102_p5, %p1096_p12 }
  0x2c   : > { %1106 = shalt.err (!%p1103_p7)
}
  0x2d   : > { %s1210_s25 = smov 192   ;;  %s1211_s26 = smov 12  }
  0x2e   : > { %976 = dma.hbm_to_vmem [thread:$0]  (!%p1299_p13), %s1297_s27, 384, %s1303_s30, %s118_s3, %s1210_s25, %s1210_s25, %s1211_s26  }
  0x2f   : > { %p871_p9 = scmp.ge.s32.totalorder %s1207_s12, 1  ;;  %p153_p3 = scmp.lt.s32.totalorder %s1207_s12, 3 }
  0x30   : > { %s870_s4 = sshll.u32 %s1207_s12, 4  ;;  %s141_s8 = scalar_lea.vmem [#allocation5], %s1290_s22 }
  0x31   : > { %p1335_p11 = pnand %p871_p9, %p153_p3  ;;  %s1343_s7 = scalar_lea.hbm %s1530_s1, %s870_s4 }
  0x32   : > { %s148_s14 = sshll.u32 %s141_s8, 4  ;;  %s139_s27 = scalar_lea.sflag [#allocation6], %s1290_s22  ;;  %s149_s14 = int_to_ptr.vmem [resolvable:$true] %s148_s14 }
  0x33   : > { %s1538_s29 = scalar_select %p1335_p11, 1, 0 }
  0x34   : > { %s1107_s30 = scalar_lea.hbm %s1343_s7, 16  ;;  %s1112_s17 = scalar_lea.hbm %s1530_s1, 32 }
  0x35   : > { %p1108_p12 = scmp.ne.s32.totalorder %s1343_s7, %s1107_s30  ;;  %p1113_p0 = scmp.lt.u32.totalorder %s1343_s7, %s1530_s1 }
  0x36   : > { %p1114_p2 = scmp.lt.u32.totalorder %s1112_s17, %s1107_s30  ;;  %p1116_p5 = scmp.lt.u32.totalorder %s1107_s30, %s1343_s7 }
  0x37   : > { %p1110_p8 = pnand %p1108_p12, %p1079_p1 }
  0x38   : > { %p1115_p4 = por %p1114_p2, %p1113_p0 }
  0x39   : > { %p1111_p10 = pneg %p1110_p8 }
  0x3a   : > { %p1117_p7 = por %p1116_p5, %p1115_p4 }
  0x3c   : > { %p1118_p9 = pnand %p1117_p7, %p1111_p10 }
  0x3e   : > { %1121 = shalt.err (!%p1118_p9)
}
  0x3f   : > { %s1122_s22 = scalar_lea.vmem %s149_s14, 16  ;;  %s1212_s25 = smov [#allocation5]  }
  0x40   : > { %p1123_p3 = scmp.ne.s32.totalorder %s149_s14, %s1122_s22  ;;  %s1127_s26 = sshll.u32 %s1212_s25, 4  ;;  %s1128_s26 = int_to_ptr.vmem [resolvable:$false] %s1127_s26 }
  0x41   : > { %s1129_s4 = scalar_lea.vmem %s1128_s26, 32  ;;  %p1130_p6 = scmp.lt.s32.totalorder %s149_s14, %s1128_s26 }
  0x42   : > { %p1125_p12 = pnand %p1123_p3, %p1079_p1  ;;  %p1131_p11 = scmp.lt.s32.totalorder %s1129_s4, %s1122_s22 }
  0x44   : > { %p1126_p8 = pneg %p1125_p12  ;;  %p1132_p0 = por %p1131_p11, %p1130_p6 }
  0x46   : > { %p1133_p2 = pnand %p1132_p0, %p1126_p8 }
  0x48   : > { %1136 = shalt.err (!%p1133_p2)
}
  0x49   : > { %979 = dma.hbm_to_vmem [thread:$0]  (!%p1299_p13), %s1343_s7, 16, %s149_s14, %s139_s27  }
  0x4a   : > { %p1539_p10 = scmp.ne.s32.totalorder %s1538_s29, 0 }
  0x4b   : > { %s1369_s5 = sand.u32 (!%p1539_p10), 1, %s1199_s10   ;;  %p1540_p6 = scmp.ne.s32.totalorder (!%p1539_p10), %s1534_s19, 0 }
  0x4c   : > { %157 = sbr.rel (%p1539_p10) target bundleno = 1588 (0x634), region = 28  ;;  %s160_s8 = scalar_lea.sflag (!%p1539_p10), [#allocation3], %s1369_s5 }
  0x4d   : > { %s966_s6 = smul.u32 (!%p1539_p10), 24, %s1369_s5 }
  0x4f   : > { %s1373_s30 = scalar_lea.vmem (!%p1539_p10), [#allocation2], %s966_s6 }
  0x53   : > { %1182 = dma.done.wait (%p1540_p6), %s160_s8, 384  }
  0x54   : > { %1184 = vsyncadd (%p1540_p6), %s160_s8, 4294966912  ;;  %s169_s28 = scalar_lea.sflag [#allocation6], %s1369_s5  ;;  %s171_s29 = scalar_lea.vmem [#allocation5], %s1369_s5 }
  0x55   : > { %1186 = dma.done.wait (%p1540_p6), %s169_s28, 16  }
  0x56   : > { %1188 = vsyncadd (%p1540_p6), %s169_s28, 4294967280  ;;  %v1213_v0 = vmov 0.0   ;;  %vm1214_vm0 = vmmov 0   ;;  %vm210_vm1 = vcmask 261120   ;;  %v1041_v1 = vld [vmem:[%s1373_s30 + $0x4] ss:$12 sps:$4 sm:$0xff]  }
  0x57   : > { %916 = vmatprep.subr.bf16.mxu0 %v1213_v0  ;;  %918 = vmatprep.mubr.msk.bf16.mxu0 %vm1214_vm0, %v1213_v0  ;;  %v215_v2 = vsel %vm210_vm1, %v1041_v1, 0  ;;  %v1043_v3 = vld [vmem:[%s1373_s30] ss:$12 sps:$4 sm:$0xff]   ;;  %vm268_vm2 = vcmask 130048   ;;  %s1215_s19 = smov 96   ;;  %s1216_s7 = smov 32  }
  0x58   : > { %922 = vmatprep.subr.bf16.mxu1 %v1213_v0  ;;  %924 = vmatprep.mubr.msk.bf16.mxu1 %vm1214_vm0, %v1213_v0  ;;  %v1398_v5 = vld [vmem:[%s171_s29] ss:$0 sm:$0xff]  ;;  %s1217_s14 = smov 64   ;;  %s872_s27 = sshll.u32 %s1369_s5, 3  ;;  %vm743_vm3 = vcmask 523264   ;;  %vm746_vm4 = vcmask 785408  }
  0x59   : > { %917 = vmatpush3.bf16.xpose.msra.mxu0 %v215_v2  ;;  %v1409_v25 = vld [vmem:[%s1373_s30 + $0x8] ss:$12 sps:$4 sm:$0xff]   ;;  %s894_s3 = sshll.u32 %s1256_s13, 7  ;;  %s195_s16 = scalar_lea.vmem [#allocation7], %s872_s27 }
  0x5a   : > { %934 = vmatprep.subr.bf16.mxu0 %v1213_v0  ;;  %923 = vmatpush3.bf16.msra.mxu1 %v1409_v25  ;;  %s773_s17 = sshll.u32 %s195_s16, 4  ;;  %s1481_s22 = scalar_lea.hbm %s1531_s2, %s894_s3  ;;  %s1483_s17 = int_to_ptr.vmem [resolvable:$true] %s773_s17 }
  0x5b   : > { %928 = vmatprep.subr.bf16.mxu1 %v1213_v0  ;;  %s760_s13 = scalar_lea.sflag [#allocation4], %s1369_s5  ;;  %s1137_s25 = scalar_lea.vmem %s1483_s17, 128 }
  0x5c   : > { %p1138_p13 = scmp.ne.s32.totalorder %s1483_s17, %s1137_s25  ;;  %p1541_p1 = scmp.ne.s32.totalorder %s1535_s20, 0 }
  0x5d   : > { %s1218_s26 = smov [#allocation7]  }
  0x5e   : > { %p1139_p11 = pnand %p1138_p13, %p1541_p1  ;;  %s1141_s4 = sshll.u32 %s1218_s26, 4  ;;  %s1142_s4 = int_to_ptr.vmem [resolvable:$false] %s1141_s4 }
  0x5f   : > { %s1143_s6 = scalar_lea.vmem %s1142_s4, 256  ;;  %p1144_p5 = scmp.lt.s32.totalorder %s1483_s17, %s1142_s4 }
  0x60   : > { %919 = vmatmul.mubr.msk.bf16.vlgmr.msra.gmra.mrb[0].mxu0 %vm210_vm1, %v1043_v3  ;;  %p1140_p4 = pneg %p1139_p11  ;;  %p1145_p7 = scmp.lt.s32.totalorder %s1143_s6, %s1137_s25 }
  0x61   : > { %936 = vmatprep.mubr.msk.bf16.mxu0 %vm1214_vm0, %v1213_v0 }
  0x62   : > { %p1146_p9 = por %p1145_p7, %p1144_p5 }
  0x64   : > { %p1147_p3 = pnand %p1146_p9, %p1140_p4 }
 0x133   : > { %v251_v4 = vpop.f32.mrb[0].mxu0 }
 0x134   : > { %v258_v6 = vmul.f32 0.17677669, %v251_v4  ;;  %v920_v7 = vpop.f32.mrb[1].mxu0 }
 0x135   : > { %v254_v8 = vpop.f32.mrb[2].mxu0 }
 0x136   : > { %v259_v9 = vmul.f32 0.17677669, %v254_v8  ;;  %v921_v10 = vpop.f32.mrb[3].mxu0  ;;  %v266_v11 = vadd.f32 %v1398_v5, %v258_v6 }
 0x138   : > { %v269_v12 = vsel %vm268_vm2, %v266_v11, -inf  ;;  %v267_v13 = vadd.f32 %v1398_v5, %v259_v9 }
 0x139   : > { %270 = vmax.xlane.f32.xlu0 %v269_v12 }
 0x13a   : > { %v272_v14 = vsel %vm268_vm2, %v267_v13, -inf }
 0x13d   : > { %273 = vmax.xlane.f32.xlu0 %v272_v14 }
 0x153   : > { %344 = vrot.lane.b32.xlu0 %v1041_v1, %s1215_s19 }
 0x157   : > { %594 = vrot.lane.b32.xlu0 %v1041_v1, %s1216_s7 }
 0x1c6   : > { %v271_v15 = vpop.xlane.xlu0 %270 }
 0x1c7   : > { %v275_v16 = vsub.f32 %v266_v11, %v271_v15 }
 0x1c9   : > { %v277_v17 = vmul.f32 1.442695, %v275_v16 }
 0x1ca   : > { %v274_v18 = vpop.xlane.xlu0 %273 }
 0x1cb   : > { %1045 = vpow2.f32 %v277_v17  ;;  %v276_v19 = vsub.f32 %v267_v13, %v274_v18 }
 0x1cd   : > { %v279_v20 = vmul.f32 1.442695, %v276_v19 }
 0x1ce   : > { %v345_v30 = vpop.permute.xlu0 %344 }
 0x1cf   : > { %1047 = vpow2.f32 %v279_v20  ;;  %v350_v34 = vsel %vm210_vm1, %v345_v30, 0 }
 0x1d2   : > { %v595_v38 = vpop.permute.xlu0 %594 }
 0x1d3   : > { %v600_v40 = vsel %vm210_vm1, %v595_v38, 0 }
 0x1d5   : > { %v1046_v21 = vpop.eup %1045 }
 0x1d6   : > { %v281_v22 = vsel %vm268_vm2, %v1046_v21, 0.0 }
 0x1d7   : > { %282 = vadd.xlane.f32.xlu1 %v281_v22 }
 0x1d9   : > { %v1048_v23 = vpop.eup %1047 }
 0x1da   : > { %v284_v24 = vsel %vm268_vm2, %v1048_v23, 0.0 }
 0x1db   : > { %285 = vadd.xlane.f32.xlu1 %v284_v24 }
 0x1ec   : > { %342 = vrot.lane.b32.xlu1 %v1043_v3, %s1215_s19 }
 0x1f0   : > { %469 = vrot.lane.b32.xlu1 %v1041_v1, %s1217_s14 }
 0x1f4   : > { %467 = vrot.lane.b32.xlu1 %v1043_v3, %s1217_s14 }
 0x1f8   : > { %592 = vrot.lane.b32.xlu1 %v1043_v3, %s1216_s7 }
 0x264   : > { %v283_v26 = vpop.xlane.xlu1 %282 }
 0x265   : > { %1049 = vrcp.f32 %v283_v26 }
 0x268   : > { %v286_v27 = vpop.xlane.xlu1 %285 }
 0x269   : > { %1051 = vrcp.f32 %v286_v27 }
 0x26c   : > { %v343_v33 = vpop.permute.xlu1 %342 }
 0x26f   : > { %v1050_v28 = vpop.eup %1049 }
 0x270   : > { %v289_v31 = vmul.f32 %v1050_v28, %v1046_v21  ;;  %v470_v36 = vpop.permute.xlu1 %469 }
 0x271   : > { %v475_v37 = vsel %vm210_vm1, %v470_v36, 0 }
 0x273   : > { %v1052_v29 = vpop.eup %1051 }
 0x274   : > { %v290_v32 = vmul.f32 %v1052_v29, %v1048_v23  ;;  %v468_v39 = vpop.permute.xlu1 %467 }
 0x276   : > { %v291_v35 = vpack.c.bf16 %v290_v32, %v289_v31 }
 0x278   : > { %925 = vmatmul.mubr.msk.bf16.vlgmr.msra.gmra.mrb[0].mxu1 %vm268_vm2, %v291_v35  ;;  %v593_v41 = vpop.permute.xlu1 %592 }
 0x279   : > { %929 = vmatpush3.bf16.xpose.msra.mxu1 %v350_v34  ;;  %930 = vmatprep.mubr.msk.bf16.mxu1 %vm1214_vm0, %v1213_v0 }
 0x27a   : > { %940 = vmatprep.subr.bf16.mxu1 %v1213_v0 }
 0x280   : > { %931 = vmatmul.mubr.msk.bf16.vlgmr.msra.gmra.mrb[4].mxu1 %vm210_vm1, %v343_v33 }
 0x281   : > { %941 = vmatpush3.bf16.xpose.msra.mxu1 %v475_v37  ;;  %942 = vmatprep.mubr.msk.bf16.mxu1 %vm1214_vm0, %v1213_v0 }
 0x282   : > { %952 = vmatprep.subr.bf16.mxu1 %v1213_v0 }
 0x288   : > { %943 = vmatmul.mubr.msk.bf16.vlgmr.msra.gmra.mrb[8].mxu1 %vm210_vm1, %v468_v39 }
 0x289   : > { %953 = vmatpush3.bf16.xpose.msra.mxu1 %v600_v40  ;;  %954 = vmatprep.mubr.msk.bf16.mxu1 %vm1214_vm0, %v1213_v0 }
 0x290   : > { %955 = vmatmul.mubr.msk.bf16.vlgmr.msra.gmra.mrb[12].mxu1 %vm210_vm1, %v593_v41 }
 0x34b   : > { %v1432_v42 = vpop.f32.mrb[0].mxu1 }
 0x34c   : > { %v926_v43 = vpop.f32.mrb[1].mxu1 }
 0x34d   : > { %v1434_v44 = vpop.f32.mrb[2].mxu1 }
 0x34e   : > { %v927_v45 = vpop.f32.mrb[3].mxu1 }
 0x353   : > { %v386_v46 = vpop.f32.mrb[4].mxu1 }
 0x354   : > { %v393_v47 = vmul.f32 0.17677669, %v386_v46  ;;  %v932_v48 = vpop.f32.mrb[5].mxu1 }
 0x355   : > { %v389_v49 = vpop.f32.mrb[6].mxu1 }
 0x356   : > { %v394_v50 = vmul.f32 0.17677669, %v389_v49  ;;  %v933_v51 = vpop.f32.mrb[7].mxu1  ;;  %v395_v52 = vadd.f32 %v1398_v5, %v393_v47 }
 0x358   : > { %v397_v53 = vsel %vm268_vm2, %v395_v52, -inf  ;;  %v396_v54 = vadd.f32 %v1398_v5, %v394_v50 }
 0x359   : > { %398 = vmax.xlane.f32.xlu0 %v397_v53 }
 0x35a   : > { %v400_v55 = vsel %vm268_vm2, %v396_v54, -inf }
 0x35b   : > { %401 = vmax.xlane.f32.xlu1 %v400_v55  ;;  %v511_v56 = vpop.f32.mrb[8].mxu1 }
 0x35c   : > { %v518_v57 = vmul.f32 0.17677669, %v511_v56  ;;  %v944_v58 = vpop.f32.mrb[9].mxu1 }
 0x35d   : > { %v514_v59 = vpop.f32.mrb[10].mxu1 }
 0x35e   : > { %v519_v60 = vmul.f32 0.17677669, %v514_v59  ;;  %v945_v61 = vpop.f32.mrb[11].mxu1  ;;  %v520_v62 = vadd.f32 %v1398_v5, %v518_v57 }
 0x360   : > { %v522_v63 = vsel %vm268_vm2, %v520_v62, -inf  ;;  %v521_v1 = vadd.f32 %v1398_v5, %v519_v60 }
 0x361   : > { %523 = vmax.xlane.f32.xlu0 %v522_v63 }
 0x362   : > { %v525_v6 = vsel %vm268_vm2, %v521_v1, -inf }
 0x363   : > { %v636_v2 = vpop.f32.mrb[12].mxu1 }
 0x364   : > { %v643_v3 = vmul.f32 0.17677669, %v636_v2  ;;  %v956_v4 = vpop.f32.mrb[13].mxu1 }
 0x365   : > { %526 = vmax.xlane.f32.xlu0 %v525_v6  ;;  %v639_v7 = vpop.f32.mrb[14].mxu1 }
 0x366   : > { %v644_v8 = vmul.f32 0.17677669, %v639_v7  ;;  %v645_v9 = vadd.f32 %v1398_v5, %v643_v3  ;;  %v957_v10 = vpop.f32.mrb[15].mxu1 }
 0x368   : > { %v647_v11 = vsel %vm268_vm2, %v645_v9, -inf  ;;  %v646_v12 = vadd.f32 %v1398_v5, %v644_v8 }
 0x369   : > { %648 = vmax.xlane.f32.xlu0 %v647_v11 }
 0x36a   : > { %v650_v13 = vsel %vm268_vm2, %v646_v12, -inf }
 0x36b   : > { %651 = vmax.xlane.f32.xlu1 %v650_v13 }
 0x3e6   : > { %v399_v14 = vpop.xlane.xlu0 %398 }
 0x3e7   : > { %v403_v15 = vsub.f32 %v395_v52, %v399_v14 }
 0x3e8   : > { %v402_v16 = vpop.xlane.xlu1 %401 }
 0x3e9   : > { %v405_v17 = vmul.f32 1.442695, %v403_v15  ;;  %v404_v18 = vsub.f32 %v396_v54, %v402_v16 }
 0x3eb   : > { %1053 = vpow2.f32 %v405_v17  ;;  %v407_v19 = vmul.f32 1.442695, %v404_v18 }
 0x3ed   : > { %1055 = vpow2.f32 %v407_v19 }
 0x3ee   : > { %v524_v20 = vpop.xlane.xlu0 %523 }
 0x3ef   : > { %v528_v21 = vsub.f32 %v520_v62, %v524_v20 }
 0x3f1   : > { %v530_v22 = vmul.f32 1.442695, %v528_v21 }
 0x3f2   : > { %v527_v23 = vpop.xlane.xlu0 %526 }
 0x3f3   : > { %1057 = vpow2.f32 %v530_v22  ;;  %v529_v24 = vsub.f32 %v521_v1, %v527_v23 }
 0x3f5   : > { %v1054_v26 = vpop.eup %1053  ;;  %v532_v5 = vmul.f32 1.442695, %v529_v24 }
 0x3f6   : > { %v649_v27 = vpop.xlane.xlu0 %648  ;;  %v409_v28 = vsel %vm268_vm2, %v1054_v26, 0.0 }
 0x3f7   : > { %v1056_v29 = vpop.eup %1055  ;;  %1059 = vpow2.f32 %v532_v5  ;;  %v653_v30 = vsub.f32 %v645_v9, %v649_v27  ;;  %410 = vadd.xlane.f32.xlu0 %v409_v28 }
 0x3f8   : > { %v412_v31 = vsel %vm268_vm2, %v1056_v29, 0.0  ;;  %v652_v39 = vpop.xlane.xlu1 %651 }
 0x3f9   : > { %v655_v32 = vmul.f32 1.442695, %v653_v30  ;;  %413 = vadd.xlane.f32.xlu1 %v412_v31  ;;  %v654_v40 = vsub.f32 %v646_v12, %v652_v39 }
 0x3fb   : > { %1061 = vpow2.f32 %v655_v32  ;;  %v657_v41 = vmul.f32 1.442695, %v654_v40 }
 0x3fd   : > { %v1058_v33 = vpop.eup %1057  ;;  %1063 = vpow2.f32 %v657_v41 }
 0x3fe   : > { %v534_v34 = vsel %vm268_vm2, %v1058_v33, 0.0 }
 0x3ff   : > { %535 = vadd.xlane.f32.xlu0 %v534_v34 }
 0x401   : > { %v1060_v35 = vpop.eup %1059 }
 0x402   : > { %v537_v36 = vsel %vm268_vm2, %v1060_v35, 0.0 }
 0x403   : > { %538 = vadd.xlane.f32.xlu1 %v537_v36 }
 0x405   : > { %v1062_v37 = vpop.eup %1061 }
 0x406   : > { %v659_v38 = vsel %vm268_vm2, %v1062_v37, 0.0 }
 0x407   : > { %660 = vadd.xlane.f32.xlu0 %v659_v38  ;;  %v1064_v43 = vpop.eup %1063 }
 0x408   : > { %v662_v45 = vsel %vm268_vm2, %v1064_v43, 0.0 }
 0x414   : > { %545 = vrot.lane.b32.xlu1 %v1409_v25, %s1217_s14 }
 0x41d   : > { %420 = vrot.lane.b32.xlu0 %v1409_v25, %s1215_s19 }
 0x438   : > { %663 = vadd.xlane.f32.xlu1 %v662_v45 }
 0x449   : > { %670 = vrot.lane.b32.xlu1 %v1409_v25, %s1216_s7 }
 0x484   : > { %v411_v47 = vpop.xlane.xlu0 %410 }
 0x486   : > { %v414_v46 = vpop.xlane.xlu1 %413 }
 0x487   : > { %1065 = vrcp.f32 %v414_v46 }
 0x488   : > { %1067 = vrcp.f32 %v411_v47 }
 0x48c   : > { %v536_v48 = vpop.xlane.xlu0 %535 }
 0x490   : > { %v539_v49 = vpop.xlane.xlu1 %538 }
 0x491   : > { %1069 = vrcp.f32 %v539_v49  ;;  %v1066_v50 = vpop.eup %1065 }
 0x492   : > { %1071 = vrcp.f32 %v536_v48  ;;  %v1068_v52 = vpop.eup %1067  ;;  %v418_v53 = vmul.f32 %v1066_v50, %v1056_v29 }
 0x493   : > { %v417_v54 = vmul.f32 %v1068_v52, %v1054_v26 }
 0x494   : > { %v661_v51 = vpop.xlane.xlu0 %660  ;;  %v546_v25 = vpop.permute.xlu1 %545 }
 0x495   : > { %v419_v56 = vpack.c.bf16 %v418_v53, %v417_v54  ;;  %1073 = vrcp.f32 %v661_v51 }
 0x498   : > { %v421_v55 = vpop.permute.xlu0 %420 }
 0x499   : > { %935 = vmatpush3.bf16.msra.mxu0 %v421_v55 }
 0x49a   : > { %946 = vmatprep.subr.bf16.mxu0 %v1213_v0 }
 0x49b   : > { %v1070_v57 = vpop.eup %1069 }
 0x49c   : > { %937 = vmatmul.mubr.msk.bf16.vlgmr.msra.gmra.mrb[4].mxu0 %vm268_vm2, %v419_v56  ;;  %v1072_v58 = vpop.eup %1071  ;;  %v543_v59 = vmul.f32 %v1070_v57, %v1060_v35 }
 0x49d   : > { %947 = vmatpush3.bf16.msra.mxu0 %v546_v25  ;;  %948 = vmatprep.mubr.msk.bf16.mxu0 %vm1214_vm0, %v1213_v0  ;;  %v542_v60 = vmul.f32 %v1072_v58, %v1058_v33 }
 0x49e   : > { %958 = vmatprep.subr.bf16.mxu0 %v1213_v0 }
 0x49f   : > { %v544_v61 = vpack.c.bf16 %v543_v59, %v542_v60  ;;  %v1074_v1 = vpop.eup %1073 }
 0x4a0   : > { %v667_v3 = vmul.f32 %v1074_v1, %v1062_v37 }
 0x4a4   : > { %949 = vmatmul.mubr.msk.bf16.vlgmr.msra.gmra.mrb[8].mxu0 %vm268_vm2, %v544_v61 }
 0x4a5   : > { %960 = vmatprep.mubr.msk.bf16.mxu0 %vm1214_vm0, %v1213_v0 }
 0x4c5   : > { %v664_v62 = vpop.xlane.xlu1 %663 }
 0x4c6   : > { %1075 = vrcp.f32 %v664_v62 }
 0x4c9   : > { %v671_v63 = vpop.permute.xlu1 %670 }
 0x4ca   : > { %959 = vmatpush3.bf16.msra.mxu0 %v671_v63 }
 0x4d0   : > { %v1076_v2 = vpop.eup %1075 }
 0x4d1   : > { %v668_v4 = vmul.f32 %v1076_v2, %v1064_v43 }
 0x4d3   : > { %v669_v6 = vpack.c.bf16 %v668_v4, %v667_v3 }
 0x4d5   : > { %961 = vmatmul.mubr.msk.bf16.vlgmr.msra.gmra.mrb[12].mxu0 %vm268_vm2, %v669_v6 }
 0x56f   : > { %v460_v7 = vpop.f32.mrb[4].mxu0 }
 0x570   : > { %v938_v8 = vpop.f32.mrb[5].mxu0 }
 0x571   : > { %v463_v9 = vpop.f32.mrb[6].mxu0 }
 0x572   : > { %v1026_v10 = vpack.i.bf16 %v463_v9, %v460_v7  ;;  %v939_v11 = vpop.f32.mrb[7].mxu0 }
 0x574   : > { %1027 = vrot.lane.b32.xlu1 %v1026_v10, %s1216_s7 }
 0x577   : > { %v585_v0 = vpop.f32.mrb[8].mxu0 }
 0x578   : > { %v950_v12 = vpop.f32.mrb[9].mxu0 }
 0x579   : > { %v588_v13 = vpop.f32.mrb[10].mxu0 }
 0x57a   : > { %v1031_v14 = vpack.i.bf16 %v588_v13, %v585_v0  ;;  %v951_v15 = vpop.f32.mrb[11].mxu0 }
 0x57c   : > { %1032 = vrot.lane.b32.xlu0 %v1031_v14, %s1217_s14 }
 0x5a8   : > { %v710_v16 = vpop.f32.mrb[12].mxu0 }
 0x5a9   : > { %v962_v17 = vpop.f32.mrb[13].mxu0 }
 0x5aa   : > { %v713_v18 = vpop.f32.mrb[14].mxu0 }
 0x5ab   : > { %v1036_v19 = vpack.i.bf16 %v713_v18, %v710_v16  ;;  %v963_v20 = vpop.f32.mrb[15].mxu0 }
 0x5ad   : > { %1037 = vrot.lane.b32.xlu1 %v1036_v19, %s1215_s19 }
 0x5e6   : > { %v1028_v21 = vpop.permute.xlu1 %1027 }
 0x5e7   : > { %v1030_v23 = vunpack.i.h.bf16 %v1028_v21  ;;  %v1029_v24 = vunpack.i.l.bf16 %v1028_v21 }
 0x5e9   : > { %v742_v28 = vsel %vm210_vm1, %v1434_v44, %v1030_v23  ;;  %v741_v29 = vsel %vm210_vm1, %v1432_v42, %v1029_v24 }
 0x5ee   : > { %v1033_v22 = vpop.permute.xlu0 %1032 }
 0x5ef   : > { %v1035_v26 = vunpack.i.h.bf16 %v1033_v22  ;;  %v1034_v5 = vunpack.i.l.bf16 %v1033_v22 }
 0x5f1   : > { %v745_v32 = vsel %vm743_vm3, %v742_v28, %v1035_v26  ;;  %v744_v33 = vsel %vm743_vm3, %v741_v29, %v1034_v5 }
 0x61f   : > { %v1038_v27 = vpop.permute.xlu1 %1037 }
 0x620   : > { %v1040_v30 = vunpack.i.h.bf16 %v1038_v27  ;;  %v1039_v31 = vunpack.i.l.bf16 %v1038_v27 }
 0x622   : > { %v748_v34 = vsel %vm746_vm4, %v745_v32, %v1040_v30  ;;  %v747_v35 = vsel %vm746_vm4, %v744_v33, %v1039_v31 }
 0x623   : > { %v898_v36 = vpack.c.bf16 %v748_v34, %v747_v35 }
 0x625   : > { %899 = vst [vmem:[%s195_s16] sm:$0xff] %v898_v36  }
 0x626   : > { %1150 = shalt.err (!%p1147_p3)
}
 0x627   : > { %s1151_s8 = scalar_lea.hbm %s1481_s22, 128  ;;  %s1155_s29 = scalar_lea.hbm %s1531_s2, 256 }
 0x628   : > { %p1152_p12 = scmp.ne.s32.totalorder %s1481_s22, %s1151_s8  ;;  %p1156_p2 = scmp.lt.u32.totalorder %s1481_s22, %s1531_s2 }
 0x629   : > { %p1157_p10 = scmp.lt.u32.totalorder %s1155_s29, %s1151_s8  ;;  %p1159_p13 = scmp.lt.u32.totalorder %s1151_s8, %s1481_s22 }
 0x62a   : > { %p1153_p8 = pnand %p1152_p12, %p1541_p1 }
 0x62b   : > { %p1158_p6 = por %p1157_p10, %p1156_p2 }
 0x62c   : > { %p1154_p0 = pneg %p1153_p8 }
 0x62d   : > { %p1160_p11 = por %p1159_p13, %p1158_p6 }
 0x62f   : > { %p1161_p4 = pnand %p1160_p11, %p1154_p0 }
 0x631   : > { %1164 = shalt.err (!%p1161_p4)
}
 0x632   : > { %s1219_s27 = smov 4  }
 0x633   : > { %971 = dma.vmem_to_hbm [thread:$0]  (%p1541_p1), %s1483_s17, 128, %s1481_s22, %s760_s13, %s1217_s14, %s1217_s14, %s1219_s27  }
 0x634 PF: > { %s788_s3 = sand.u32 1, %s1195_s9   ;;  %p1542_p5 = scmp.ne.s32.totalorder %s1536_s21, 0 }
 0x635   : > { %p1543_p7 = scmp.ge.s32.totalorder %s1207_s12, 2  ;;  %s789_s16 = scalar_lea.sflag [#allocation4], %s788_s3 }
 0x637   : > { %p981_p9 = pnand %p1543_p7, %p1542_p5 }
 0x639   : > { %1190 = dma.done.wait (!%p981_p9), %s789_s16, 128  }
 0x63a   : > { %1192 = vsyncadd (!%p981_p9), %s789_s16, 4294967168  ;;  %p18_p3 = scmp.ge.s32.totalorder %s1260_s15, 4   ;;  %s1544_s9 = smov %s1199_s10 }
 0x63b   : > { %s1545_s10 = smov %s1203_s11  ;;  %s1546_s11 = smov %s1272_s18 }
 0x63c   : > { %s1547_s12 = smov %s1260_s15  ;;  %20 = sbr.rel (!%p18_p3) target bundleno = 7 (0x7), region = 86 }
 0x643   :  { %794 = vsyncpa [#allocation3], 1 }
 0x644   :  { %796 = vsyncpa [#allocation3 + $0x1], 1 }
 0x645   :  { %797 = vsyncpa [#allocation6], 1 }
 0x646   :  { %799 = vsyncpa [#allocation6 + $0x1], 1 }
 0x647   :  { %800 = vsyncpa [#allocation4], 1 }
 0x648   :  { %802 = vsyncpa [#allocation4 + $0x1], 1 }

// kernel: bert_y_forward.17
= control target key start
LH: loop header
LB: loop body
LE: loop exit
PB: predicated region body
PF: predicated region fallthrough
CT: control target
= control target key end

     0   :  { %v588_v2 = vmov 0   ;;  %s705_s0 = inlined_call_operand.vmem [shape: bf16[32,128], index: 0, kind: input, shape index: {}]   ;;  %s706_s1 = inlined_call_operand.vmem [shape: bf16[128,384], index: 1, kind: input, shape index: {}]   ;;  %s707_s2 = inlined_call_operand.vmem [shape: f32[1,384], index: 2, kind: input, shape index: {}]   ;;  %s708_s3 = inlined_call_operand.hbm [shape: bf16[32,384], index: 3, kind: output, shape index: {}]  }
   0x1   :  { %v530_v0 = vld [vmem:[%s706_s1 + $0x4] ss:$12 sps:$4 sm:$0xff]   ;;  %v532_v1 = vld [vmem:[%s706_s1] ss:$12 sps:$4 sm:$0xff]   ;;  %252 = vmatprep.mubr.bf16.mxu0 %v588_v2  ;;  %v533_v3 = vld [vmem:[%s706_s1 + $0x1c] ss:$12 sps:$4 sm:$0xff]  }
   0x2   :  { %220 = vmatprep.subr.bf16.mxu0 %v530_v0  ;;  %v535_v4 = vld [vmem:[%s706_s1 + $0x18] ss:$12 sps:$4 sm:$0xff]   ;;  %v536_v5 = vld [vmem:[%s706_s1 + $0x8] ss:$12 sps:$4 sm:$0xff]   ;;  %v540_v7 = vld [vmem:[%s706_s1 + $0x20] ss:$12 sps:$4 sm:$0xff]  }
   0x3   :  { %221 = vmatpush1.bf16.msra.mxu0 %v532_v1  ;;  %v537_v6 = vld [vmem:[%s706_s1 + $0x34] ss:$12 sps:$4 sm:$0xff]   ;;  %506 = vmatprep.subr.bf16.mxu1 %v536_v5  ;;  %v539_v8 = vld [vmem:[%s706_s1 + $0x30] ss:$12 sps:$4 sm:$0xff]   ;;  %v541_v9 = vld [vmem:[%s706_s1 + $0x4c] ss:$12 sps:$4 sm:$0xff]  }
   0x4   :  { %222 = vmatprep.subr.bf16.mxu0 %v533_v3  ;;  %507 = vmatpush3.bf16.msra.mxu1 %v536_v5  ;;  %v544_v10 = vld [vmem:[%s706_s1 + $0x38] ss:$12 sps:$4 sm:$0xff]   ;;  %v543_v11 = vld [vmem:[%s706_s1 + $0x48] ss:$12 sps:$4 sm:$0xff]   ;;  %v548_v12 = vld [vmem:[%s706_s1 + $0x50] ss:$12 sps:$4 sm:$0xff]  }
   0x5   :  { %508 = vmatprep.subr.bf16.mxu1 %v540_v7  ;;  %v545_v13 = vld [vmem:[%s706_s1 + $0x64] ss:$12 sps:$4 sm:$0xff]   ;;  %v547_v14 = vld [vmem:[%s706_s1 + $0x60] ss:$12 sps:$4 sm:$0xff]   ;;  %v552_v15 = vld [vmem:[%s706_s1 + $0x68] ss:$12 sps:$4 sm:$0xff]  }
   0x6   :  { %v549_v16 = vld [vmem:[%s706_s1 + $0x7c] ss:$12 sps:$4 sm:$0xff]   ;;  %v551_v17 = vld [vmem:[%s706_s1 + $0x78] ss:$12 sps:$4 sm:$0xff]   ;;  %v556_v19 = vld [vmem:[%s706_s1 + $0x80] ss:$12 sps:$4 sm:$0xff]  }
   0x7   :  { %223 = vmatpush1.bf16.msra.mxu0 %v535_v4  ;;  %v561_v18 = vld [vmem:[%s705_s0] sm:$0xff]  }
   0x8   :  { %224 = vmatprep.subr.bf16.mxu0 %v537_v6  ;;  %509 = vmatpush3.bf16.msra.mxu1 %v540_v7  ;;  %v553_v20 = vld [vmem:[%s706_s1 + $0x94] ss:$12 sps:$4 sm:$0xff]  }
   0x9   :  { %510 = vmatprep.subr.bf16.mxu1 %v544_v10  ;;  %522 = vmatprep.mubr.bf16.mxu1 %v561_v18 }
   0xb   :  { %225 = vmatpush1.bf16.msra.mxu0 %v539_v8 }
   0xc   :  { %226 = vmatprep.subr.bf16.mxu0 %v541_v9  ;;  %511 = vmatpush3.bf16.msra.mxu1 %v544_v10 }
   0xd   :  { %512 = vmatprep.subr.bf16.mxu1 %v548_v12 }
   0xf   :  { %227 = vmatpush1.bf16.msra.mxu0 %v543_v11 }
  0x10   :  { %228 = vmatprep.subr.bf16.mxu0 %v545_v13  ;;  %513 = vmatpush3.bf16.msra.mxu1 %v548_v12 }
  0x11   :  { %514 = vmatprep.subr.bf16.mxu1 %v552_v15 }
  0x13   :  { %229 = vmatpush1.bf16.msra.mxu0 %v547_v14 }
  0x14   :  { %230 = vmatprep.subr.bf16.mxu0 %v549_v16 }
  0x15   :  { %8 = vsyncpa [#allocation4], 0  ;;  %515 = vmatpush3.bf16.msra.mxu1 %v552_v15  ;;  %v555_v21 = vld [vmem:[%s706_s1 + $0x90] ss:$12 sps:$4 sm:$0xff]   ;;  %v560_v22 = vld [vmem:[%s706_s1 + $0x98] ss:$12 sps:$4 sm:$0xff]   ;;  %v363_v27 = vlaneseq }
  0x16   :  { %516 = vmatprep.subr.bf16.mxu1 %v556_v19  ;;  %v557_v23 = vld [vmem:[%s706_s1 + $0xac] ss:$12 sps:$4 sm:$0xff]   ;;  %v559_v24 = vld [vmem:[%s706_s1 + $0xa8] ss:$12 sps:$4 sm:$0xff]   ;;  %v562_v25 = vld [vmem:[%s706_s1 + $0xb0] ss:$12 sps:$4 sm:$0xff]  }
  0x17   :  { %231 = vmatpush1.bf16.msra.mxu0 %v551_v17  ;;  %v563_v26 = vld [vmem:[%s705_s0 + $0x8] sm:$0xff]   ;;  %v364_v28 = vshrl.u32 %v363_v27, 7  ;;  %v361_v30 = vld [vmem:[%s707_s2] sm:$0x7]  ;;  %s589_s0 = smov [#allocation3]  }
  0x18   :  { %232 = vmatprep.subr.bf16.mxu0 %v553_v20  ;;  %s443_s1 = sshll.u32 %s589_s0, 4  ;;  %s444_s1 = int_to_ptr.vmem [resolvable:$true] %s443_s1 }
  0x19   :  { %517 = vmatpush3.bf16.msra.mxu1 %v556_v19  ;;  %v365_v29 = vsub.s32 0, %v364_v28  ;;  %v369_v31 = vsub.s32 1, %v364_v28  ;;  %v373_v32 = vsub.s32 2, %v364_v28  ;;  %s564_s2 = scalar_lea.vmem %s444_s1, 768  ;;  %p569_p1 = scmp.lt.s32.totalorder %s444_s1, %s444_s1 }
  0x1a   :  { %518 = vmatprep.subr.bf16.mxu1 %v560_v22  ;;  %p565_p0 = scmp.ne.s32.totalorder %s444_s1, %s564_s2  ;;  %p570_p2 = scmp.lt.s32.totalorder %s564_s2, %s564_s2 }
  0x1b   :  { %233 = vmatpush1.bf16.msra.mxu0 %v555_v21  ;;  %v366_v33 = vrot.slane %v361_v30, %v365_v29  ;;  %v370_v34 = vrot.slane %v361_v30, %v369_v31  ;;  %v374_v36 = vrot.slane %v361_v30, %v373_v32 }
  0x1c   :  { %234 = vmatprep.subr.bf16.mxu0 %v557_v23  ;;  %p571_p3 = por %p570_p2, %p569_p1 }
  0x1d   :  { %519 = vmatpush3.bf16.msra.mxu1 %v560_v22 }
  0x1e   :  { %520 = vmatprep.subr.bf16.mxu1 %v562_v25  ;;  %p572_p4 = pnand %p571_p3, %p565_p0 }
  0x1f   :  { %235 = vmatpush1.bf16.msra.mxu0 %v559_v24 }
  0x21   :  { %521 = vmatpush3.bf16.msra.mxu1 %v562_v25 }
  0x22   :  { %253 = vmatmul.mubr.bf16.vlgmr.msra.gmra.mrb[0].mxu0 %v561_v18 }
  0x23   :  { %262 = vmatprep.mubr.bf16.mxu0 %v588_v2 }
  0x24   :  { %523 = vmatmul.mubr.bf16.vlgmr.msra.gmra.mrb[0].mxu1 %v563_v26 }
  0x2a   :  { %263 = vmatmul.mubr.bf16.gmra.mrb[4].mxu0 %v563_v26 }
  0xf5   :  { %v254_v35 = vpop.f32.mrb[0].mxu0 }
  0xf6   :  { %v378_v37 = vadd.f32 %v366_v33, %v254_v35  ;;  %v256_v38 = vpop.f32.mrb[1].mxu0 }
  0xf7   :  { %v379_v39 = vadd.f32 %v370_v34, %v256_v38  ;;  %v258_v40 = vpop.f32.mrb[2].mxu0  ;;  %v524_v43 = vpop.f32.mrb[0].mxu1 }
  0xf8   :  { %v381_v41 = vadd.f32 %v366_v33, %v258_v40  ;;  %v260_v42 = vpop.f32.mrb[3].mxu0  ;;  %v386_v46 = vadd.f32 %v524_v43, %v374_v36  ;;  %v307_v47 = vpop.f32.mrb[1].mxu1 }
  0xf9   :  { %v488_v44 = vpack.c.bf16 %v379_v39, %v378_v37  ;;  %v382_v45 = vadd.f32 %v370_v34, %v260_v42  ;;  %v380_v48 = vadd.f32 %v374_v36, %v307_v47  ;;  %v525_v49 = vpop.f32.mrb[2].mxu1 }
  0xfa   :  { %v493_v51 = vpack.c.bf16 %v386_v46, %v386_v46  ;;  %v389_v52 = vadd.f32 %v525_v49, %v374_v36  ;;  %v310_v53 = vpop.f32.mrb[3].mxu1 }
  0xfb   :  { %430 = vst [vmem:[#allocation3] sm:$0xff] %v488_v44  ;;  %v490_v50 = vpack.c.bf16 %v382_v45, %v381_v41  ;;  %v489_v54 = vpack.c.bf16 %v380_v48, %v380_v48  ;;  %v383_v55 = vadd.f32 %v374_v36, %v310_v53 }
  0xfc   :  { %435 = vst [vmem:[#allocation3 + $0x20] sm:$0xf] %v493_v51  ;;  %v495_v56 = vpack.c.bf16 %v389_v52, %v389_v52 }
  0xfd   :  { %432 = vst [vmem:[#allocation3 + $0xc] sm:$0xff] %v490_v50  ;;  %v264_v57 = vpop.f32.mrb[4].mxu0  ;;  %431 = vst [vmem:[#allocation3 + $0x8] sm:$0xf] %v489_v54  ;;  %v491_v59 = vpack.c.bf16 %v383_v55, %v383_v55 }
  0xfe   :  { %v384_v58 = vadd.f32 %v366_v33, %v264_v57  ;;  %v266_v60 = vpop.f32.mrb[5].mxu0  ;;  %437 = vst [vmem:[#allocation3 + $0x2c] sm:$0xf] %v495_v56 }
  0xff   :  { %v385_v61 = vadd.f32 %v370_v34, %v266_v60  ;;  %v268_v62 = vpop.f32.mrb[6].mxu0  ;;  %433 = vst [vmem:[#allocation3 + $0x14] sm:$0xf] %v491_v59 }
 0x100   :  { %v387_v63 = vadd.f32 %v366_v33, %v268_v62  ;;  %v270_v0 = vpop.f32.mrb[7].mxu0 }
 0x101   :  { %v492_v1 = vpack.c.bf16 %v385_v61, %v384_v58  ;;  %v388_v2 = vadd.f32 %v370_v34, %v270_v0 }
 0x103   :  { %434 = vst [vmem:[#allocation3 + $0x18] sm:$0xff] %v492_v1  ;;  %v494_v3 = vpack.c.bf16 %v388_v2, %v387_v63 }
 0x105   :  { %436 = vst [vmem:[#allocation3 + $0x24] sm:$0xff] %v494_v3 }
 0x106   :  { %575 = shalt.err (!%p572_p4)
}
 0x107   :  { %s576_s14 = scalar_lea.hbm %s708_s3, 768 }
 0x108   :  { %p577_p5 = scmp.ne.s32.totalorder %s708_s3, %s576_s14  ;;  %p580_p6 = scmp.lt.u32.totalorder %s576_s14, %s708_s3 }
 0x10a   :  { %p582_p7 = pnand %p580_p6, %p577_p5 }
 0x10c   :  { %585 = shalt.err (!%p582_p7)
}
 0x10d   :  { %s590_s19 = smov 192   ;;  %s591_s20 = smov 12  }
 0x10e   :  { %449 = dma.vmem_to_hbm [thread:$0]  %s444_s1, 768, %s708_s3, [#allocation4], %s590_s19, %s590_s19, %s591_s20  }
 0x10f   :  { %586 = dma.done.wait [#allocation4], 768  }
 0x110   :  { %587 = vsyncadd [#allocation4], 4294966528 }
 0x111   :  { %453 = vsyncpa [#allocation4], 1 }

// kernel: bert_y_forward.19
= control target key start
LH: loop header
LB: loop body
LE: loop exit
PB: predicated region body
PF: predicated region fallthrough
CT: control target
= control target key end

     0   :  { %11 = vsyncpa [#allocation4], 0  ;;  %s708_s0 = inlined_call_operand.hbm [shape: bf16[32,128], index: 0, kind: input, shape index: {}]   ;;  %s709_s1 = inlined_call_operand.hbm [shape: bf16[128,128], index: 1, kind: input, shape index: {}]   ;;  %s710_s2 = inlined_call_operand.vmem [shape: f32[1,128], index: 2, kind: input, shape index: {}]   ;;  %s711_s3 = inlined_call_operand.hbm [shape: bf16[32,128], index: 3, kind: input, shape index: {}]   ;;  %s712_s4 = inlined_call_operand.hbm [shape: f32[1,128], index: 4, kind: input, shape index: {}]   ;;  %s713_s5 = inlined_call_operand.hbm [shape: f32[1,128], index: 5, kind: input, shape index: {}]   ;;  %s714_s6 = inlined_call_operand.vmem [shape: bf16[32,128], index: 6, kind: output, shape index: {}]  }
   0x1   :  { %12 = vsyncpa [#allocation6], 0 }
   0x2   :  { %13 = vsyncpa [#allocation9], 0  ;;  %s573_s21 = smov [#allocation5]   ;;  %s574_s23 = smov [#allocation8]  }
   0x3   :  { %s31_s22 = sshll.u32 %s573_s21, 4  ;;  %s58_s24 = sshll.u32 %s574_s23, 4  ;;  %s32_s22 = int_to_ptr.vmem [resolvable:$true] %s31_s22  ;;  %s615_s24 = int_to_ptr.vmem [resolvable:$true] %s58_s24 }
   0x4   :  { %s457_s27 = scalar_lea.hbm %s709_s1, 1024 }
   0x5   :  { %p458_p0 = scmp.ne.s32.totalorder %s709_s1, %s457_s27  ;;  %p461_p1 = scmp.lt.u32.totalorder %s457_s27, %s709_s1 }
   0x7   :  { %p463_p2 = pnand %p461_p1, %p458_p0 }
   0x9   :  { %466 = shalt.err (!%p463_p2)
}
   0xa   :  { %s467_s8 = scalar_lea.vmem %s32_s22, 1024  ;;  %p472_p4 = scmp.lt.s32.totalorder %s32_s22, %s32_s22 }
   0xb   :  { %p468_p3 = scmp.ne.s32.totalorder %s32_s22, %s467_s8  ;;  %p473_p5 = scmp.lt.s32.totalorder %s467_s8, %s467_s8 }
   0xd   :  { %p474_p6 = por %p473_p5, %p472_p4 }
   0xf   :  { %p475_p7 = pnand %p474_p6, %p468_p3 }
  0x11   :  { %478 = shalt.err (!%p475_p7)
}
  0x12   :  { %s575_s9 = smov 64   ;;  %s576_s10 = smov 4  }
  0x13   :  { %37 = dma.hbm_to_vmem [thread:$0]  %s709_s1, 1024, %s32_s22, [#allocation6], %s575_s9, %s575_s9, %s576_s10  }
  0x14   :  { %s479_s15 = scalar_lea.hbm %s712_s4, 16 }
  0x15   :  { %p480_p8 = scmp.ne.s32.totalorder %s712_s4, %s479_s15  ;;  %p483_p9 = scmp.lt.u32.totalorder %s479_s15, %s712_s4 }
  0x17   :  { %p485_p10 = pnand %p483_p9, %p480_p8 }
  0x19   :  { %488 = shalt.err (!%p485_p10)
}
  0x1a   :  { %s489_s20 = scalar_lea.vmem %s615_s24, 16  ;;  %s493_s1 = scalar_lea.vmem %s615_s24, 32 }
  0x1b   :  { %p490_p11 = scmp.ne.s32.totalorder %s615_s24, %s489_s20  ;;  %p494_p12 = scmp.lt.s32.totalorder %s615_s24, %s615_s24 }
  0x1c   :  { %p495_p13 = scmp.lt.s32.totalorder %s493_s1, %s489_s20 }
  0x1e   :  { %p496_p0 = por %p495_p13, %p494_p12 }
  0x20   :  { %p497_p1 = pnand %p496_p0, %p490_p11 }
  0x22   :  { %500 = shalt.err (!%p497_p1)
}
  0x23   :  { %61 = dma.hbm_to_vmem [thread:$0]  %s712_s4, 16, %s615_s24, [#allocation9]  }
  0x24   :  { %s577_s23 = smov [#allocation3]   ;;  %s578_s26 = smov [#allocation7]  }
  0x25   :  { %s19_s25 = sshll.u32 %s577_s23, 4  ;;  %s45_s27 = sshll.u32 %s578_s26, 4  ;;  %s20_s25 = int_to_ptr.vmem [resolvable:$true] %s19_s25  ;;  %s650_s27 = int_to_ptr.vmem [resolvable:$true] %s45_s27 }
  0x26   :  { %s501_s30 = scalar_lea.hbm %s708_s0, 256 }
  0x27   :  { %p502_p2 = scmp.ne.s32.totalorder %s708_s0, %s501_s30  ;;  %p505_p3 = scmp.lt.u32.totalorder %s501_s30, %s708_s0 }
  0x29   :  { %p507_p4 = pnand %p505_p3, %p502_p2 }
  0x2b   :  { %510 = shalt.err (!%p507_p4)
}
  0x2c   :  { %s511_s4 = scalar_lea.vmem %s20_s25, 256  ;;  %p516_p6 = scmp.lt.s32.totalorder %s20_s25, %s20_s25 }
  0x2d   :  { %p512_p5 = scmp.ne.s32.totalorder %s20_s25, %s511_s4  ;;  %p517_p7 = scmp.lt.s32.totalorder %s511_s4, %s511_s4 }
  0x2f   :  { %p518_p8 = por %p517_p7, %p516_p6 }
  0x31   :  { %p519_p9 = pnand %p518_p8, %p512_p5 }
  0x33   :  { %522 = shalt.err (!%p519_p9)
}
  0x34   :  { %25 = dma.hbm_to_vmem [thread:$0]  %s708_s0, 256, %s20_s25, [#allocation4], %s575_s9, %s575_s9, %s576_s10  }
  0x35   :  { %s523_s16 = scalar_lea.hbm %s711_s3, 256 }
  0x36   :  { %p524_p10 = scmp.ne.s32.totalorder %s711_s3, %s523_s16  ;;  %p527_p11 = scmp.lt.u32.totalorder %s523_s16, %s711_s3 }
  0x38   :  { %p529_p12 = pnand %p527_p11, %p524_p10 }
  0x3a   :  { %532 = shalt.err (!%p529_p12)
}
  0x3b   :  { %s533_s1 = scalar_lea.vmem %s650_s27, 256  ;;  %p538_p0 = scmp.lt.s32.totalorder %s650_s27, %s650_s27 }
  0x3c   :  { %p534_p13 = scmp.ne.s32.totalorder %s650_s27, %s533_s1  ;;  %p539_p1 = scmp.lt.s32.totalorder %s533_s1, %s533_s1 }
  0x3e   :  { %p540_p2 = por %p539_p1, %p538_p0 }
  0x40   :  { %p541_p3 = pnand %p540_p2, %p534_p13 }
  0x42   :  { %544 = shalt.err (!%p541_p3)
}
  0x43   :  { %51 = dma.hbm_to_vmem [thread:$0]  %s711_s3, 256, %s650_s27, [#allocation6], %s575_s9, %s575_s9, %s576_s10  }
  0x44   :  { %s579_s22 = smov [#allocation10]   ;;  %s545_s28 = scalar_lea.hbm %s713_s5, 16 }
  0x45   :  { %s68_s23 = sshll.u32 %s579_s22, 4  ;;  %p546_p4 = scmp.ne.s32.totalorder %s713_s5, %s545_s28  ;;  %s69_s23 = int_to_ptr.vmem [resolvable:$true] %s68_s23 }
  0x46   :  { %p549_p5 = scmp.lt.u32.totalorder %s545_s28, %s713_s5 }
  0x48   :  { %p551_p6 = pnand %p549_p5, %p546_p4 }
  0x4a   :  { %554 = shalt.err (!%p551_p6)
}
  0x4b   :  { %s555_s11 = scalar_lea.vmem %s69_s23, 16  ;;  %s559_s3 = scalar_lea.vmem %s69_s23, 32 }
  0x4c   :  { %p556_p7 = scmp.ne.s32.totalorder %s69_s23, %s555_s11  ;;  %p560_p8 = scmp.lt.s32.totalorder %s69_s23, %s69_s23 }
  0x4d   :  { %p561_p9 = scmp.lt.s32.totalorder %s559_s3, %s555_s11 }
  0x4f   :  { %p562_p10 = por %p561_p9, %p560_p8 }
  0x51   :  { %p563_p11 = pnand %p562_p10, %p556_p7 }
  0x53   :  { %566 = shalt.err (!%p563_p11)
}
  0x54   :  { %71 = dma.hbm_to_vmem [thread:$0]  %s713_s5, 16, %s69_s23, [#allocation9]  }
  0x55   :  { %567 = dma.done.wait [#allocation4], 256  }
  0x56   :  { %568 = vsyncadd [#allocation4], 4294967040 }
  0x57   :  { %569 = dma.done.wait [#allocation6], 1280  }
  0x58   :  { %570 = vsyncadd [#allocation6], 4294966016 }
  0x59   :  { %571 = dma.done.wait [#allocation9], 32  }
  0x5a   :  { %572 = vsyncadd [#allocation9], 4294967264  ;;  %v439_v0 = vld [vmem:[#allocation5] sm:$0xff]   ;;  %v440_v1 = vld [vmem:[#allocation5 + $0x8] sm:$0xff]  }
  0x5b   :  { %412 = vmatprep.subr.bf16.mxu0 %v439_v0  ;;  %v441_v2 = vld [vmem:[#allocation5 + $0x10] sm:$0xff]   ;;  %v442_v3 = vld [vmem:[#allocation5 + $0x18] sm:$0xff]   ;;  %v443_v5 = vld [vmem:[#allocation5 + $0x20] sm:$0xff]  }
  0x5c   :  { %413 = vmatpush3.bf16.msra.mxu0 %v439_v0  ;;  %v447_v4 = vld [vmem:[#allocation3] sm:$0xff]   ;;  %v444_v6 = vld [vmem:[#allocation5 + $0x28] sm:$0xff]   ;;  %v446_v8 = vld [vmem:[#allocation5 + $0x38] sm:$0xff]  }
  0x5d   :  { %414 = vmatprep.subr.bf16.mxu0 %v440_v1  ;;  %428 = vmatprep.mubr.bf16.mxu0 %v447_v4  ;;  %v445_v7 = vld [vmem:[#allocation5 + $0x30] sm:$0xff]   ;;  %v448_v9 = vld [vmem:[#allocation3 + $0x8] sm:$0xff]   ;;  %v400_v10 = vld [vmem:[#allocation7 + $0x8] sm:$0xff]  }
  0x5e   :  { %v383_v11 = vld [vmem:[#allocation7] sm:$0xff]   ;;  %v371_v12 = vld [vmem:[%s710_s2] ss:$0 sm:$0xff]  ;;  %v388_v13 = vunpack.c.l.bf16 %v400_v10  ;;  %v389_v23 = vunpack.c.h.bf16 %v400_v10  ;;  %v373_v0 = vld [vmem:[#allocation10] ss:$0 sm:$0xff] }
  0x5f   :  { %v384_v15 = vunpack.c.l.bf16 %v383_v11  ;;  %v385_v26 = vunpack.c.h.bf16 %v383_v11  ;;  %v372_v59 = vld [vmem:[#allocation8] ss:$0 sm:$0xff] }
  0x60   :  { %415 = vmatpush3.bf16.msra.mxu0 %v440_v1 }
  0x61   :  { %416 = vmatprep.subr.bf16.mxu0 %v441_v2 }
  0x64   :  { %417 = vmatpush3.bf16.msra.mxu0 %v441_v2 }
  0x65   :  { %418 = vmatprep.subr.bf16.mxu0 %v442_v3 }
  0x68   :  { %419 = vmatpush3.bf16.msra.mxu0 %v442_v3 }
  0x69   :  { %420 = vmatprep.subr.bf16.mxu0 %v443_v5 }
  0x6c   :  { %421 = vmatpush3.bf16.msra.mxu0 %v443_v5 }
  0x6d   :  { %422 = vmatprep.subr.bf16.mxu0 %v444_v6 }
  0x70   :  { %423 = vmatpush3.bf16.msra.mxu0 %v444_v6 }
  0x71   :  { %424 = vmatprep.subr.bf16.mxu0 %v445_v7 }
  0x74   :  { %425 = vmatpush3.bf16.msra.mxu0 %v445_v7 }
  0x75   :  { %426 = vmatprep.subr.bf16.mxu0 %v446_v8 }
  0x78   :  { %427 = vmatpush3.bf16.msra.mxu0 %v446_v8 }
  0x7b   :  { %429 = vmatmul.mubr.bf16.vlgmr.msra.gmra.mrb[0].mxu0 %v448_v9 }
 0x14e   :  { %v430_v14 = vpop.f32.mrb[0].mxu0 }
 0x14f   :  { %v253_v16 = vadd.f32 %v430_v14, %v371_v12  ;;  %v214_v17 = vpop.f32.mrb[1].mxu0 }
 0x150   :  { %v251_v18 = vadd.f32 %v371_v12, %v214_v17  ;;  %v431_v19 = vpop.f32.mrb[2].mxu0 }
 0x151   :  { %v254_v20 = vadd.f32 %v431_v19, %v371_v12  ;;  %v217_v21 = vpop.f32.mrb[3].mxu0  ;;  %v265_v22 = vadd.f32 %v388_v13, %v253_v16 }
 0x152   :  { %v252_v24 = vadd.f32 %v371_v12, %v217_v21  ;;  %v263_v25 = vadd.f32 %v384_v15, %v251_v18 }
 0x153   :  { %273 = vadd.xlane.f32.xlu1 %v265_v22  ;;  %v266_v27 = vadd.f32 %v389_v23, %v254_v20 }
 0x154   :  { %269 = vadd.xlane.f32.xlu0 %v263_v25  ;;  %v264_v28 = vadd.f32 %v385_v26, %v252_v24 }
 0x157   :  { %275 = vadd.xlane.f32.xlu1 %v266_v27 }
 0x158   :  { %271 = vadd.xlane.f32.xlu0 %v264_v28 }
 0x1e0   :  { %v274_v29 = vpop.xlane.xlu1 %273 }
 0x1e1   :  { %v270_v30 = vpop.xlane.xlu0 %269  ;;  %v280_v31 = vmul.f32 0.0078125, %v274_v29 }
 0x1e2   :  { %v278_v32 = vmul.f32 0.0078125, %v270_v30 }
 0x1e3   :  { %v284_v36 = vsub.f32 %v265_v22, %v280_v31 }
 0x1e4   :  { %v282_v33 = vsub.f32 %v263_v25, %v278_v32  ;;  %v276_v34 = vpop.xlane.xlu1 %275 }
 0x1e5   :  { %v272_v35 = vpop.xlane.xlu0 %271  ;;  %v281_v37 = vmul.f32 0.0078125, %v276_v34  ;;  %v288_v42 = vmul.f32 %v284_v36, %v284_v36 }
 0x1e6   :  { %v279_v38 = vmul.f32 0.0078125, %v272_v35  ;;  %v286_v39 = vmul.f32 %v282_v33, %v282_v33 }
 0x1e7   :  { %v285_v41 = vsub.f32 %v266_v27, %v281_v37 }
 0x1e8   :  { %v283_v40 = vsub.f32 %v264_v28, %v279_v38  ;;  %290 = vadd.xlane.f32.xlu0 %v286_v39 }
 0x1e9   :  { %v289_v44 = vmul.f32 %v285_v41, %v285_v41 }
 0x1ea   :  { %v287_v43 = vmul.f32 %v283_v40, %v283_v40 }
 0x1ec   :  { %294 = vadd.xlane.f32.xlu0 %v288_v42  ;;  %292 = vadd.xlane.f32.xlu1 %v287_v43 }
 0x1f0   :  { %296 = vadd.xlane.f32.xlu1 %v289_v44 }
 0x275   :  { %v291_v45 = vpop.xlane.xlu0 %290 }
 0x276   :  { %v298_v46 = vmul.f32 0.0078125, %v291_v45 }
 0x278   :  { %v302_v47 = vadd.f32 1e-12, %v298_v46 }
 0x279   :  { %v293_v48 = vpop.xlane.xlu1 %292  ;;  %v295_v49 = vpop.xlane.xlu0 %294 }
 0x27a   :  { %449 = vrsqrt.f32 %v302_v47  ;;  %v299_v50 = vmul.f32 0.0078125, %v293_v48  ;;  %v300_v51 = vmul.f32 0.0078125, %v295_v49 }
 0x27c   :  { %v303_v52 = vadd.f32 1e-12, %v299_v50  ;;  %v304_v53 = vadd.f32 1e-12, %v300_v51 }
 0x27d   :  { %v297_v54 = vpop.xlane.xlu1 %296 }
 0x27e   :  { %451 = vrsqrt.f32 %v303_v52  ;;  %v301_v55 = vmul.f32 0.0078125, %v297_v54 }
 0x27f   :  { %453 = vrsqrt.f32 %v304_v53 }
 0x280   :  { %v305_v56 = vadd.f32 1e-12, %v301_v55 }
 0x282   :  { %455 = vrsqrt.f32 %v305_v56 }
 0x284   :  { %v450_v57 = vpop.eup %449 }
 0x285   :  { %v310_v58 = vmul.f32 %v450_v57, %v282_v33 }
 0x287   :  { %v320_v62 = vmul.f32 %v372_v59, %v310_v58 }
 0x288   :  { %v452_v60 = vpop.eup %451 }
 0x289   :  { %v454_v61 = vpop.eup %453  ;;  %v311_v63 = vmul.f32 %v452_v60, %v283_v40  ;;  %v330_v4 = vadd.f32 %v373_v0, %v320_v62 }
 0x28a   :  { %v312_v1 = vmul.f32 %v454_v61, %v284_v36 }
 0x28b   :  { %v321_v2 = vmul.f32 %v372_v59, %v311_v63 }
 0x28c   :  { %v456_v3 = vpop.eup %455  ;;  %v322_v6 = vmul.f32 %v372_v59, %v312_v1 }
 0x28d   :  { %v331_v5 = vadd.f32 %v373_v0, %v321_v2  ;;  %v313_v7 = vmul.f32 %v456_v3, %v285_v41 }
 0x28e   :  { %v332_v10 = vadd.f32 %v373_v0, %v322_v6 }
 0x28f   :  { %v393_v8 = vpack.c.bf16 %v331_v5, %v330_v4  ;;  %v323_v9 = vmul.f32 %v372_v59, %v313_v7 }
 0x291   :  { %394 = vst [vmem:[%s714_s6] sm:$0xff] %v393_v8   ;;  %v333_v11 = vadd.f32 %v373_v0, %v323_v9 }
 0x293   :  { %v398_v12 = vpack.c.bf16 %v333_v11, %v332_v10 }
 0x295   :  { %401 = vst [vmem:[%s714_s6 + $0x8] sm:$0xff] %v398_v12  }
 0x296   :  { %358 = vsyncpa [#allocation4], 1 }
 0x297   :  { %359 = vsyncpa [#allocation6], 1 }
 0x298   :  { %360 = vsyncpa [#allocation9], 1 }

// kernel: bert_y_forward.21
= control target key start
LH: loop header
LB: loop body
LE: loop exit
PB: predicated region body
PF: predicated region fallthrough
CT: control target
= control target key end

     0   :  { %s607_s1 = inlined_call_operand.vmem [shape: bf16[256,128], index: 1, kind: input, shape index: {}]   ;;  %s608_s0 = inlined_call_operand.vmem [shape: bf16[32,256], index: 0, kind: input, shape index: {}]   ;;  %s609_s3 = inlined_call_operand.vmem [shape: bf16[32,128], index: 3, kind: input, shape index: {}]   ;;  %s610_s2 = inlined_call_operand.vmem [shape: f32[1,128], index: 2, kind: input, shape index: {}]   ;;  %s611_s4 = inlined_call_operand.vmem [shape: f32[1,128], index: 4, kind: input, shape index: {}]   ;;  %s612_s5 = inlined_call_operand.vmem [shape: f32[1,128], index: 5, kind: input, shape index: {}]   ;;  %s613_s6 = inlined_call_operand.vmem [shape: bf16[32,128], index: 6, kind: output, shape index: {}]  }
   0x1   :  { %v461_v0 = vld [vmem:[%s607_s1 + $0x40] sm:$0xff]   ;;  %v463_v2 = vld [vmem:[%s607_s1 + $0x48] sm:$0xff]   ;;  %v465_v4 = vld [vmem:[%s607_s1 + $0x50] sm:$0xff]  }
   0x2   :  { %v462_v1 = vld [vmem:[%s607_s1] sm:$0xff]   ;;  %417 = vmatprep.subr.bf16.mxu0 %v461_v0  ;;  %445 = vmatprep.subr.bf16.mxu1 %v461_v0  ;;  %v464_v3 = vld [vmem:[%s607_s1 + $0x8] sm:$0xff]   ;;  %v466_v5 = vld [vmem:[%s607_s1 + $0x10] sm:$0xff]  }
   0x3   :  { %418 = vmatpush3.bf16.msra.mxu0 %v462_v1  ;;  %453 = vmatpush3.bf16.msra.mxu1 %v462_v1  ;;  %v467_v6 = vld [vmem:[%s607_s1 + $0x58] sm:$0xff]   ;;  %v469_v8 = vld [vmem:[%s607_s1 + $0x60] sm:$0xff]   ;;  %v471_v10 = vld [vmem:[%s607_s1 + $0x68] sm:$0xff]  }
   0x4   :  { %419 = vmatprep.subr.bf16.mxu0 %v463_v2  ;;  %446 = vmatprep.subr.bf16.mxu1 %v463_v2  ;;  %v468_v7 = vld [vmem:[%s607_s1 + $0x18] sm:$0xff]   ;;  %v470_v9 = vld [vmem:[%s607_s1 + $0x20] sm:$0xff]   ;;  %v472_v13 = vld [vmem:[%s607_s1 + $0x28] sm:$0xff]  }
   0x5   :  { %v479_v11 = vld [vmem:[%s608_s0 + $0x4] ss:$8 sps:$4 sm:$0xff]   ;;  %v482_v12 = vld [vmem:[%s608_s0 + $0x14] ss:$8 sps:$4 sm:$0xff]   ;;  %v477_v18 = vld [vmem:[%s608_s0] ss:$8 sps:$4 sm:$0xff]  }
   0x6   :  { %v473_v14 = vld [vmem:[%s607_s1 + $0x70] sm:$0xff]   ;;  %220 = vmatprep.mubr.bf16.mxu0 %v479_v11  ;;  %228 = vmatprep.mubr.bf16.mxu1 %v482_v12  ;;  %v475_v16 = vld [vmem:[%s607_s1 + $0x78] sm:$0xff]   ;;  %v415_v20 = vld [vmem:[%s609_s3 + $0x8] sm:$0xff]  }
   0x7   :  { %420 = vmatpush3.bf16.msra.mxu0 %v464_v3  ;;  %454 = vmatpush3.bf16.msra.mxu1 %v464_v3  ;;  %v474_v15 = vld [vmem:[%s607_s1 + $0x30] sm:$0xff]   ;;  %v476_v17 = vld [vmem:[%s607_s1 + $0x38] sm:$0xff]   ;;  %v398_v21 = vld [vmem:[%s609_s3] sm:$0xff]   ;;  %v403_v31 = vunpack.c.l.bf16 %v415_v20  ;;  %v404_v35 = vunpack.c.h.bf16 %v415_v20 }
   0x8   :  { %421 = vmatprep.subr.bf16.mxu0 %v465_v4  ;;  %447 = vmatprep.subr.bf16.mxu1 %v465_v4  ;;  %v480_v19 = vld [vmem:[%s608_s0 + $0x10] ss:$8 sps:$4 sm:$0xff]   ;;  %v386_v25 = vld [vmem:[%s610_s2] ss:$0 sm:$0xff]  ;;  %v399_v32 = vunpack.c.l.bf16 %v398_v21  ;;  %v400_v40 = vunpack.c.h.bf16 %v398_v21 }
   0xb   :  { %422 = vmatpush3.bf16.msra.mxu0 %v466_v5  ;;  %455 = vmatpush3.bf16.msra.mxu1 %v466_v5 }
   0xc   :  { %423 = vmatprep.subr.bf16.mxu0 %v467_v6  ;;  %448 = vmatprep.subr.bf16.mxu1 %v467_v6 }
   0xf   :  { %424 = vmatpush3.bf16.msra.mxu0 %v468_v7  ;;  %456 = vmatpush3.bf16.msra.mxu1 %v468_v7 }
  0x10   :  { %425 = vmatprep.subr.bf16.mxu0 %v469_v8  ;;  %449 = vmatprep.subr.bf16.mxu1 %v469_v8 }
  0x13   :  { %426 = vmatpush3.bf16.msra.mxu0 %v470_v9  ;;  %457 = vmatpush3.bf16.msra.mxu1 %v470_v9 }
  0x14   :  { %427 = vmatprep.subr.bf16.mxu0 %v471_v10  ;;  %450 = vmatprep.subr.bf16.mxu1 %v471_v10 }
  0x17   :  { %428 = vmatpush3.bf16.msra.mxu0 %v472_v13  ;;  %458 = vmatpush3.bf16.msra.mxu1 %v472_v13  ;;  %v387_v13 = vld [vmem:[%s611_s4] ss:$0 sm:$0xff] }
  0x18   :  { %429 = vmatprep.subr.bf16.mxu0 %v473_v14  ;;  %451 = vmatprep.subr.bf16.mxu1 %v473_v14 }
  0x1b   :  { %430 = vmatpush3.bf16.msra.mxu0 %v474_v15  ;;  %459 = vmatpush3.bf16.msra.mxu1 %v474_v15 }
  0x1c   :  { %431 = vmatprep.subr.bf16.mxu0 %v475_v16  ;;  %452 = vmatprep.subr.bf16.mxu1 %v475_v16 }
  0x1f   :  { %432 = vmatpush3.bf16.msra.mxu0 %v476_v17  ;;  %460 = vmatpush3.bf16.msra.mxu1 %v476_v17 }
  0x22   :  { %221 = vmatmul.mubr.bf16.vlgmr.msra.gmra.mrb[0].mxu0 %v477_v18  ;;  %229 = vmatmul.mubr.bf16.vlgmr.msra.gmra.mrb[0].mxu1 %v480_v19  ;;  %v388_v18 = vld [vmem:[%s612_s5] ss:$0 sm:$0xff] }
  0xf5   :  { %v433_v22 = vpop.f32.mrb[0].mxu0  ;;  %v439_v23 = vpop.f32.mrb[0].mxu1 }
  0xf6   :  { %v434_v24 = vpop.f32.mrb[1].mxu0  ;;  %v440_v26 = vpop.f32.mrb[1].mxu1 }
  0xf7   :  { %v435_v27 = vadd.f32 %v434_v24, %v433_v22  ;;  %v441_v28 = vadd.f32 %v440_v26, %v439_v23  ;;  %v436_v29 = vpop.f32.mrb[2].mxu0  ;;  %v442_v30 = vpop.f32.mrb[2].mxu1 }
  0xf8   :  { %v437_v33 = vpop.f32.mrb[3].mxu0  ;;  %v443_v34 = vpop.f32.mrb[3].mxu1 }
  0xf9   :  { %v259_v36 = vadd.f32 %v435_v27, %v386_v25  ;;  %v261_v37 = vadd.f32 %v441_v28, %v386_v25  ;;  %v438_v38 = vadd.f32 %v437_v33, %v436_v29  ;;  %v444_v39 = vadd.f32 %v443_v34, %v442_v30 }
  0xfb   :  { %v260_v41 = vadd.f32 %v438_v38, %v386_v25  ;;  %v262_v42 = vadd.f32 %v444_v39, %v386_v25  ;;  %v273_v43 = vadd.f32 %v403_v31, %v261_v37  ;;  %v271_v44 = vadd.f32 %v399_v32, %v259_v36 }
  0xfd   :  { %281 = vadd.xlane.f32.xlu1 %v273_v43  ;;  %277 = vadd.xlane.f32.xlu0 %v271_v44  ;;  %v274_v45 = vadd.f32 %v404_v35, %v262_v42  ;;  %v272_v46 = vadd.f32 %v400_v40, %v260_v41 }
 0x101   :  { %283 = vadd.xlane.f32.xlu1 %v274_v45  ;;  %279 = vadd.xlane.f32.xlu0 %v272_v46 }
 0x18a   :  { %v282_v47 = vpop.xlane.xlu1 %281  ;;  %v278_v48 = vpop.xlane.xlu0 %277 }
 0x18b   :  { %v288_v49 = vmul.f32 0.0078125, %v282_v47  ;;  %v286_v50 = vmul.f32 0.0078125, %v278_v48 }
 0x18d   :  { %v290_v51 = vsub.f32 %v271_v44, %v286_v50  ;;  %v292_v54 = vsub.f32 %v273_v43, %v288_v49 }
 0x18e   :  { %v284_v52 = vpop.xlane.xlu1 %283  ;;  %v280_v53 = vpop.xlane.xlu0 %279 }
 0x18f   :  { %v289_v55 = vmul.f32 0.0078125, %v284_v52  ;;  %v287_v56 = vmul.f32 0.0078125, %v280_v53  ;;  %v294_v57 = vmul.f32 %v290_v51, %v290_v51  ;;  %v296_v60 = vmul.f32 %v292_v54, %v292_v54 }
 0x191   :  { %v291_v58 = vsub.f32 %v272_v46, %v287_v56  ;;  %298 = vadd.xlane.f32.xlu0 %v294_v57  ;;  %v293_v59 = vsub.f32 %v274_v45, %v289_v55 }
 0x193   :  { %v295_v61 = vmul.f32 %v291_v58, %v291_v58  ;;  %v297_v62 = vmul.f32 %v293_v59, %v293_v59 }
 0x195   :  { %302 = vadd.xlane.f32.xlu0 %v296_v60  ;;  %300 = vadd.xlane.f32.xlu1 %v295_v61 }
 0x199   :  { %304 = vadd.xlane.f32.xlu1 %v297_v62 }
 0x21e   :  { %v299_v63 = vpop.xlane.xlu0 %298 }
 0x21f   :  { %v306_v0 = vmul.f32 0.0078125, %v299_v63 }
 0x221   :  { %v310_v1 = vadd.f32 1e-12, %v306_v0 }
 0x222   :  { %v301_v2 = vpop.xlane.xlu1 %300  ;;  %v303_v3 = vpop.xlane.xlu0 %302 }
 0x223   :  { %483 = vrsqrt.f32 %v310_v1  ;;  %v307_v4 = vmul.f32 0.0078125, %v301_v2  ;;  %v308_v5 = vmul.f32 0.0078125, %v303_v3 }
 0x225   :  { %v311_v6 = vadd.f32 1e-12, %v307_v4  ;;  %v312_v7 = vadd.f32 1e-12, %v308_v5 }
 0x226   :  { %v305_v8 = vpop.xlane.xlu1 %304 }
 0x227   :  { %485 = vrsqrt.f32 %v311_v6  ;;  %v309_v9 = vmul.f32 0.0078125, %v305_v8 }
 0x228   :  { %487 = vrsqrt.f32 %v312_v7 }
 0x229   :  { %v313_v10 = vadd.f32 1e-12, %v309_v9 }
 0x22b   :  { %489 = vrsqrt.f32 %v313_v10 }
 0x22d   :  { %v484_v11 = vpop.eup %483 }
 0x22e   :  { %v318_v12 = vmul.f32 %v484_v11, %v290_v51 }
 0x230   :  { %v328_v16 = vmul.f32 %v387_v13, %v318_v12 }
 0x231   :  { %v486_v14 = vpop.eup %485 }
 0x232   :  { %v488_v15 = vpop.eup %487  ;;  %v319_v17 = vmul.f32 %v486_v14, %v291_v58  ;;  %v338_v22 = vadd.f32 %v388_v18, %v328_v16 }
 0x233   :  { %v320_v19 = vmul.f32 %v488_v15, %v292_v54 }
 0x234   :  { %v329_v20 = vmul.f32 %v387_v13, %v319_v17 }
 0x235   :  { %v490_v21 = vpop.eup %489  ;;  %v330_v24 = vmul.f32 %v387_v13, %v320_v19 }
 0x236   :  { %v339_v23 = vadd.f32 %v388_v18, %v329_v20  ;;  %v321_v25 = vmul.f32 %v490_v21, %v293_v59 }
 0x237   :  { %v340_v28 = vadd.f32 %v388_v18, %v330_v24 }
 0x238   :  { %v408_v26 = vpack.c.bf16 %v339_v23, %v338_v22  ;;  %v331_v27 = vmul.f32 %v387_v13, %v321_v25 }
 0x23a   :  { %409 = vst [vmem:[%s613_s6] sm:$0xff] %v408_v26   ;;  %v341_v29 = vadd.f32 %v388_v18, %v331_v27 }
 0x23c   :  { %v413_v30 = vpack.c.bf16 %v341_v29, %v340_v28 }
 0x23e   :  { %416 = vst [vmem:[%s613_s6 + $0x8] sm:$0xff] %v413_v30  }

// kernel: bert_y_forward.20
= control target key start
LH: loop header
LB: loop body
LE: loop exit
PB: predicated region body
PF: predicated region fallthrough
CT: control target
= control target key end

     0   :  { %8 = vsyncpa [#allocation4], 0  ;;  %s478_s12 = smov [#allocation3]   ;;  %s591_s0 = inlined_call_operand.vmem [shape: bf16[32,128], index: 0, kind: input, shape index: {}]   ;;  %s592_s1 = inlined_call_operand.hbm [shape: bf16[128,256], index: 1, kind: input, shape index: {}]   ;;  %s593_s2 = inlined_call_operand.vmem [shape: f32[1,256], index: 2, kind: input, shape index: {}]   ;;  %s594_s3 = inlined_call_operand.vmem [shape: bf16[32,256], index: 3, kind: output, shape index: {}]  }
   0x1   :  { %s16_s13 = sshll.u32 %s478_s12, 4  ;;  %s454_s16 = scalar_lea.hbm %s592_s1, 2048  ;;  %s17_s13 = int_to_ptr.vmem [resolvable:$true] %s16_s13 }
   0x2   :  { %p455_p0 = scmp.ne.s32.totalorder %s592_s1, %s454_s16  ;;  %p458_p1 = scmp.lt.u32.totalorder %s454_s16, %s592_s1 }
   0x4   :  { %p460_p2 = pnand %p458_p1, %p455_p0 }
   0x6   :  { %463 = shalt.err (!%p460_p2)
}
   0x7   :  { %s464_s21 = scalar_lea.vmem %s17_s13, 2048  ;;  %p469_p4 = scmp.lt.s32.totalorder %s17_s13, %s17_s13 }
   0x8   :  { %p465_p3 = scmp.ne.s32.totalorder %s17_s13, %s464_s21  ;;  %p470_p5 = scmp.lt.s32.totalorder %s464_s21, %s464_s21 }
   0xa   :  { %p471_p6 = por %p470_p5, %p469_p4 }
   0xc   :  { %p472_p7 = pnand %p471_p6, %p465_p3 }
   0xe   :  { %475 = shalt.err (!%p472_p7)
}
   0xf   :  { %s479_s22 = smov 128   ;;  %s480_s23 = smov 8  }
  0x10   :  { %22 = dma.hbm_to_vmem [thread:$0]  %s592_s1, 2048, %s17_s13, [#allocation4], %s479_s22, %s479_s22, %s480_s23  }
  0x11   :  { %476 = dma.done.wait [#allocation4], 2048  }
  0x12   :  { %477 = vsyncadd [#allocation4], 4294965248  ;;  %v481_v0 = vmov 0   ;;  %v412_v1 = vld [vmem:[#allocation3 + $0x4] ss:$8 sps:$4 sm:$0xff]   ;;  %v243_v19 = vlaneseq }
  0x13   :  { %193 = vmatprep.mubr.bf16.mxu0 %v481_v0  ;;  %203 = vmatprep.mubr.bf16.mxu1 %v481_v0  ;;  %v414_v2 = vld [vmem:[#allocation3] ss:$8 sps:$4 sm:$0xff]   ;;  %v415_v3 = vld [vmem:[#allocation3 + $0x14] ss:$8 sps:$4 sm:$0xff]   ;;  %v417_v4 = vld [vmem:[#allocation3 + $0x10] ss:$8 sps:$4 sm:$0xff]  }
  0x14   :  { %161 = vmatprep.subr.bf16.mxu0 %v412_v1  ;;  %392 = vmatprep.subr.bf16.mxu1 %v412_v1  ;;  %v418_v5 = vld [vmem:[#allocation3 + $0x24] ss:$8 sps:$4 sm:$0xff]   ;;  %v420_v6 = vld [vmem:[#allocation3 + $0x20] ss:$8 sps:$4 sm:$0xff]   ;;  %v421_v7 = vld [vmem:[#allocation3 + $0x34] ss:$8 sps:$4 sm:$0xff]  }
  0x15   :  { %162 = vmatpush1.bf16.msra.mxu0 %v414_v2  ;;  %400 = vmatpush1.bf16.msra.mxu1 %v414_v2  ;;  %v423_v8 = vld [vmem:[#allocation3 + $0x30] ss:$8 sps:$4 sm:$0xff]   ;;  %v424_v9 = vld [vmem:[#allocation3 + $0x44] ss:$8 sps:$4 sm:$0xff]   ;;  %v426_v10 = vld [vmem:[#allocation3 + $0x40] ss:$8 sps:$4 sm:$0xff]  }
  0x16   :  { %163 = vmatprep.subr.bf16.mxu0 %v415_v3  ;;  %393 = vmatprep.subr.bf16.mxu1 %v415_v3  ;;  %v427_v11 = vld [vmem:[#allocation3 + $0x54] ss:$8 sps:$4 sm:$0xff]   ;;  %v429_v12 = vld [vmem:[#allocation3 + $0x50] ss:$8 sps:$4 sm:$0xff]   ;;  %v430_v13 = vld [vmem:[#allocation3 + $0x64] ss:$8 sps:$4 sm:$0xff]  }
  0x17   :  { %v432_v14 = vld [vmem:[#allocation3 + $0x60] ss:$8 sps:$4 sm:$0xff]   ;;  %v433_v15 = vld [vmem:[#allocation3 + $0x74] ss:$8 sps:$4 sm:$0xff]   ;;  %v435_v16 = vld [vmem:[#allocation3 + $0x70] ss:$8 sps:$4 sm:$0xff]  }
  0x18   :  { %v436_v17 = vld [vmem:[%s591_s0] sm:$0xff]   ;;  %v437_v18 = vld [vmem:[%s591_s0 + $0x8] sm:$0xff]   ;;  %v244_v20 = vshrl.u32 %v243_v19, 7 }
  0x19   :  { %164 = vmatpush1.bf16.msra.mxu0 %v417_v4  ;;  %401 = vmatpush1.bf16.msra.mxu1 %v417_v4  ;;  %v241_v22 = vld [vmem:[%s593_s2] sm:$0x3] }
  0x1a   :  { %165 = vmatprep.subr.bf16.mxu0 %v418_v5  ;;  %394 = vmatprep.subr.bf16.mxu1 %v418_v5  ;;  %v245_v21 = vsub.s32 0, %v244_v20  ;;  %v249_v23 = vsub.s32 1, %v244_v20 }
  0x1c   :  { %v246_v24 = vrot.slane %v241_v22, %v245_v21  ;;  %v250_v25 = vrot.slane %v241_v22, %v249_v23 }
  0x1d   :  { %166 = vmatpush1.bf16.msra.mxu0 %v420_v6  ;;  %402 = vmatpush1.bf16.msra.mxu1 %v420_v6 }
  0x1e   :  { %167 = vmatprep.subr.bf16.mxu0 %v421_v7  ;;  %395 = vmatprep.subr.bf16.mxu1 %v421_v7 }
  0x21   :  { %168 = vmatpush1.bf16.msra.mxu0 %v423_v8  ;;  %403 = vmatpush1.bf16.msra.mxu1 %v423_v8 }
  0x22   :  { %169 = vmatprep.subr.bf16.mxu0 %v424_v9  ;;  %396 = vmatprep.subr.bf16.mxu1 %v424_v9 }
  0x25   :  { %170 = vmatpush1.bf16.msra.mxu0 %v426_v10  ;;  %404 = vmatpush1.bf16.msra.mxu1 %v426_v10 }
  0x26   :  { %171 = vmatprep.subr.bf16.mxu0 %v427_v11  ;;  %397 = vmatprep.subr.bf16.mxu1 %v427_v11 }
  0x29   :  { %172 = vmatpush1.bf16.msra.mxu0 %v429_v12  ;;  %405 = vmatpush1.bf16.msra.mxu1 %v429_v12 }
  0x2a   :  { %173 = vmatprep.subr.bf16.mxu0 %v430_v13  ;;  %398 = vmatprep.subr.bf16.mxu1 %v430_v13 }
  0x2d   :  { %174 = vmatpush1.bf16.msra.mxu0 %v432_v14  ;;  %406 = vmatpush1.bf16.msra.mxu1 %v432_v14 }
  0x2e   :  { %175 = vmatprep.subr.bf16.mxu0 %v433_v15  ;;  %399 = vmatprep.subr.bf16.mxu1 %v433_v15 }
  0x31   :  { %176 = vmatpush1.bf16.msra.mxu0 %v435_v16  ;;  %407 = vmatpush1.bf16.msra.mxu1 %v435_v16 }
  0x34   :  { %194 = vmatmul.mubr.bf16.vlgmr.msra.gmra.mrb[0].mxu0 %v436_v17  ;;  %204 = vmatmul.mubr.bf16.vlgmr.msra.gmra.mrb[0].mxu1 %v437_v18 }
 0x107   :  { %v195_v26 = vpop.f32.mrb[0].mxu0  ;;  %v205_v27 = vpop.f32.mrb[0].mxu1 }
 0x108   :  { %v523_v28 = vadd.f32 %v246_v24, %v195_v26  ;;  %v525_v29 = vadd.f32 %v246_v24, %v205_v27  ;;  %v197_v30 = vpop.f32.mrb[1].mxu0  ;;  %v207_v31 = vpop.f32.mrb[1].mxu1 }
 0x109   :  { %v527_v32 = vadd.f32 %v250_v25, %v197_v30  ;;  %v529_v33 = vadd.f32 %v250_v25, %v207_v31  ;;  %v199_v34 = vpop.f32.mrb[2].mxu0  ;;  %v209_v35 = vpop.f32.mrb[2].mxu1 }
 0x10a   :  { %v269_v36 = vmul.f32 0.044715, %v523_v28  ;;  %v273_v37 = vmul.f32 0.044715, %v525_v29  ;;  %v537_v42 = vadd.f32 %v246_v24, %v199_v34  ;;  %v539_v43 = vadd.f32 %v246_v24, %v209_v35  ;;  %v201_v44 = vpop.f32.mrb[3].mxu0  ;;  %v211_v45 = vpop.f32.mrb[3].mxu1 }
 0x10b   :  { %v270_v38 = vmul.f32 0.044715, %v527_v32  ;;  %v274_v39 = vmul.f32 0.044715, %v529_v33  ;;  %v543_v48 = vadd.f32 %v250_v25, %v201_v44  ;;  %v554_v58 = vadd.f32 %v250_v25, %v211_v45 }
 0x10c   :  { %v277_v40 = vmul.f32 %v269_v36, %v523_v28  ;;  %v281_v41 = vmul.f32 %v273_v37, %v525_v29  ;;  %v271_v51 = vmul.f32 0.044715, %v537_v42  ;;  %v275_v54 = vmul.f32 0.044715, %v539_v43 }
 0x10d   :  { %v278_v46 = vmul.f32 %v270_v38, %v527_v32  ;;  %v282_v47 = vmul.f32 %v274_v39, %v529_v33  ;;  %v272_v62 = vmul.f32 0.044715, %v543_v48  ;;  %v276_v7 = vmul.f32 0.044715, %v554_v58 }
 0x10e   :  { %v285_v49 = vmul.f32 %v277_v40, %v523_v28  ;;  %v289_v50 = vmul.f32 %v281_v41, %v525_v29  ;;  %v279_v57 = vmul.f32 %v271_v51, %v537_v42  ;;  %v283_v61 = vmul.f32 %v275_v54, %v539_v43 }
 0x10f   :  { %v286_v52 = vmul.f32 %v278_v46, %v527_v32  ;;  %v290_v53 = vmul.f32 %v282_v47, %v529_v33  ;;  %v280_v5 = vmul.f32 %v272_v62, %v543_v48  ;;  %v284_v11 = vmul.f32 %v276_v7, %v554_v58 }
 0x110   :  { %v293_v55 = vadd.f32 %v285_v49, %v523_v28  ;;  %v297_v56 = vadd.f32 %v289_v50, %v525_v29  ;;  %v287_v1 = vmul.f32 %v279_v57, %v537_v42  ;;  %v291_v4 = vmul.f32 %v283_v61, %v539_v43 }
 0x111   :  { %v294_v59 = vadd.f32 %v286_v52, %v527_v32  ;;  %v298_v60 = vadd.f32 %v290_v53, %v529_v33  ;;  %v288_v9 = vmul.f32 %v280_v5, %v543_v48  ;;  %v292_v14 = vmul.f32 %v284_v11, %v554_v58 }
 0x112   :  { %v301_v63 = vmul.f32 0.7978846, %v293_v55  ;;  %v305_v0 = vmul.f32 0.7978846, %v297_v56  ;;  %v295_v6 = vadd.f32 %v287_v1, %v537_v42  ;;  %v299_v8 = vadd.f32 %v291_v4, %v539_v43 }
 0x113   :  { %v302_v2 = vmul.f32 0.7978846, %v294_v59  ;;  %v306_v3 = vmul.f32 0.7978846, %v298_v60  ;;  %v296_v13 = vadd.f32 %v288_v9, %v543_v48  ;;  %v300_v16 = vadd.f32 %v292_v14, %v554_v58 }
 0x114   :  { %438 = vtanh.f32 %v301_v63  ;;  %v303_v10 = vmul.f32 0.7978846, %v295_v6  ;;  %v307_v12 = vmul.f32 0.7978846, %v299_v8  ;;  %v261_v20 = vmul.f32 0.5, %v523_v28 }
 0x115   :  { %440 = vtanh.f32 %v305_v0  ;;  %v304_v15 = vmul.f32 0.7978846, %v296_v13  ;;  %v308_v17 = vmul.f32 0.7978846, %v300_v16  ;;  %v265_v23 = vmul.f32 0.5, %v525_v29 }
 0x116   :  { %442 = vtanh.f32 %v302_v2  ;;  %v262_v27 = vmul.f32 0.5, %v527_v32  ;;  %v266_v35 = vmul.f32 0.5, %v529_v33  ;;  %v263_v28 = vmul.f32 0.5, %v537_v42 }
 0x117   :  { %444 = vtanh.f32 %v306_v3  ;;  %v264_v47 = vmul.f32 0.5, %v543_v48  ;;  %v267_v33 = vmul.f32 0.5, %v539_v43  ;;  %v268_v51 = vmul.f32 0.5, %v554_v58 }
 0x118   :  { %446 = vtanh.f32 %v303_v10 }
 0x119   :  { %448 = vtanh.f32 %v307_v12 }
 0x11a   :  { %450 = vtanh.f32 %v304_v15 }
 0x11b   :  { %452 = vtanh.f32 %v308_v17 }
 0x11e   :  { %v439_v18 = vpop.eup %438 }
 0x11f   :  { %v441_v19 = vpop.eup %440  ;;  %v317_v21 = vadd.f32 1.0, %v439_v18 }
 0x120   :  { %v443_v22 = vpop.eup %442  ;;  %v321_v24 = vadd.f32 1.0, %v441_v19 }
 0x121   :  { %v445_v25 = vpop.eup %444  ;;  %v325_v26 = vmul.f32 %v317_v21, %v261_v20  ;;  %v318_v30 = vadd.f32 1.0, %v443_v22 }
 0x122   :  { %v447_v31 = vpop.eup %446  ;;  %v329_v34 = vmul.f32 %v321_v24, %v265_v23  ;;  %v322_v36 = vadd.f32 1.0, %v445_v25 }
 0x123   :  { %v449_v37 = vpop.eup %448  ;;  %v326_v38 = vmul.f32 %v318_v30, %v262_v27  ;;  %v319_v39 = vadd.f32 1.0, %v447_v31 }
 0x124   :  { %v330_v40 = vmul.f32 %v322_v36, %v266_v35  ;;  %v451_v41 = vpop.eup %450  ;;  %v323_v29 = vadd.f32 1.0, %v449_v37 }
 0x125   :  { %v388_v44 = vpack.c.bf16 %v326_v38, %v325_v26  ;;  %v327_v46 = vmul.f32 %v319_v39, %v263_v28  ;;  %v320_v32 = vadd.f32 1.0, %v451_v41  ;;  %v453_v49 = vpop.eup %452 }
 0x126   :  { %v390_v45 = vpack.c.bf16 %v330_v40, %v329_v34  ;;  %v331_v50 = vmul.f32 %v323_v29, %v267_v33  ;;  %v324_v52 = vadd.f32 1.0, %v453_v49 }
 0x127   :  { %357 = vst [vmem:[%s594_s3] sm:$0xff] %v388_v44  ;;  %v328_v42 = vmul.f32 %v320_v32, %v264_v47 }
 0x128   :  { %359 = vst [vmem:[%s594_s3 + $0x10] sm:$0xff] %v390_v45  ;;  %v332_v54 = vmul.f32 %v324_v52, %v268_v51 }
 0x129   :  { %v389_v53 = vpack.c.bf16 %v328_v42, %v327_v46 }
 0x12a   :  { %v391_v48 = vpack.c.bf16 %v332_v54, %v331_v50 }
 0x12b   :  { %358 = vst [vmem:[%s594_s3 + $0x8] sm:$0xff] %v389_v53 }
 0x12c   :  { %360 = vst [vmem:[%s594_s3 + $0x18] sm:$0xff] %v391_v48 }
 0x12d   :  { %365 = vsyncpa [#allocation4], 1 }

</bundles_post_ra>
